<compile_context>
chip_gen: v6e
topology: v6e:2x2x1
jax: 0.10.0
libtpu: 0.0.40
codegen_flags: <defaults>
</compile_context>

<pallas_src>
import functools

import jax
import jax.numpy as jnp
from jax import lax
from jax.experimental import pallas as pl
from jax.experimental.pallas import tpu as pltpu

LRELU_SLOPE = 0.2
BN_EPS = 1e-5
VMEM_LIMIT = 32 * 1024 * 1024   # safe scoped-VMEM budget on v5e/v6e/v7x


def _round_up(x, m):
    return (x + m - 1) // m * m


def _choose_tile(m):
    # Small problems: one 128-aligned tile (minimal padding, zero per-step
    # overhead).  Large problems: pick the tm in {512,256,128} that minimizes
    # round_up(m, tm) - m, preferring the largest on ties.
    if m <= 1024:
        return _round_up(max(m, 1), 128)
    best_tm, best_pad = 512, _round_up(m, 512) - m
    for cand in (256, 128):
        pad = _round_up(m, cand) - m
        if pad < best_pad:
            best_tm, best_pad = cand, pad
    return best_tm


def _mosaic_params(sem):
    return pltpu.CompilerParams(dimension_semantics=sem,
                                vmem_limit_bytes=VMEM_LIMIT)


# ---------------------------------------------------------------------------
# Pallas kernels
# ---------------------------------------------------------------------------
def _mm_lrelu_kernel(w_ref, x_ref, o_ref):
    """(Cout,K)bf16 @ (K,TM)bf16 -> f32 -> LeakyReLU -> bf16 (Cout,TM)."""
    y = jnp.dot(w_ref[...], x_ref[...], preferred_element_type=jnp.float32)
    y = jnp.where(y >= 0.0, y, LRELU_SLOPE * y)
    o_ref[...] = y.astype(o_ref.dtype)


def _conv_bn_lrelu_kernel(m_true, w_ref, x_ref, g_ref, b_ref, o_ref,
                          y_scr, sum_scr, ssq_scr):
    """Fused conv + training-mode BatchNorm + LeakyReLU in one pallas_call.

    grid = (phase, m_tile).  Phase 0: tiled matmul, pre-BN f32 activations
    kept in the VMEM scratch `y_scr`, per-channel sum / sum-of-squares
    accumulated.  Phase 1: fold BN into a per-channel affine and apply
    affine + LeakyReLU from the VMEM-resident activations (no HBM re-read).
    """
    phase = pl.program_id(0)
    i = pl.program_id(1)

    @pl.when((phase == 0) & (i == 0))
    def _():
        sum_scr[...] = jnp.zeros_like(sum_scr)
        ssq_scr[...] = jnp.zeros_like(ssq_scr)

    @pl.when(phase == 0)
    def _():
        y = jnp.dot(w_ref[...], x_ref[...], preferred_element_type=jnp.float32)
        y_scr[i] = y
        sum_scr[...] += jnp.sum(y, axis=1, keepdims=True)
        ssq_scr[...] += jnp.sum(y * y, axis=1, keepdims=True)

    @pl.when(phase == 1)
    def _():
        # Biased batch variance over the true element count (padded patch
        # columns are exactly zero, so they contribute nothing to the sums).
        inv_n = 1.0 / float(m_true)
        mean = sum_scr[...] * inv_n
        var = jnp.maximum(ssq_scr[...] * inv_n - mean * mean, 0.0)
        scale = g_ref[...] * lax.rsqrt(var + BN_EPS)
        shift = b_ref[...] - mean * scale
        y = y_scr[i] * scale + shift
        y = jnp.where(y >= 0.0, y, LRELU_SLOPE * y)
        o_ref[...] = y.astype(o_ref.dtype)


def _mm_sigmoid_kernel(w_ref, x_ref, o_ref):
    """Final 1-channel conv on the MXU, sigmoid via EUP exp + approx recip."""
    y = jnp.dot(w_ref[...], x_ref[...], preferred_element_type=jnp.float32)
    s = pl.reciprocal(1.0 + jnp.exp(-y), approx=True)
    o_ref[...] = jnp.minimum(s, 1.0)        # guard approx-recip overshoot


# ---------------------------------------------------------------------------
# Wrapper-side data movement (im2col in the lane-dense (K, M) orientation)
# ---------------------------------------------------------------------------
def _im2col_T(x_cbhw, kh, kw, stride, pad):
    """(C,B,H,W) -> patch matrix (K = kh*kw*C, M = B*OH*OW), plus OH, OW."""
    # TODO(synk): an implicit-GEMM formulation (in-kernel strided window DMAs)
    # would avoid materializing this kh*kw-replicated patch matrix in HBM.
    x = jnp.pad(x_cbhw, ((0, 0), (0, 0), (pad, pad), (pad, pad)))
    c, b, h, w = x.shape
    oh = (h - kh) // stride + 1
    ow = (w - kw) // stride + 1
    taps = []
    for i in range(kh):
        for j in range(kw):
            taps.append(x[:, :, i:i + stride * oh:stride, j:j + stride * ow:stride])
    p = jnp.stack(taps, axis=0)                        # (T, C, B, OH, OW)
    p = p.reshape(kh * kw * c, b * oh * ow)            # K index = tap*C + c
    return p, oh, ow


def _prep_patches(x_cbhw, kh, kw, stride, pad):
    # Cast BEFORE the kh*kw-fold replication so the patch materialization is
    # done entirely in bf16 (half the HBM traffic of f32-then-cast).
    p, oh, ow = _im2col_T(x_cbhw.astype(jnp.bfloat16), kh, kw, stride, pad)
    k, m = p.shape
    tm = _choose_tile(m)
    mp = _round_up(m, tm)
    if mp > m:
        p = jnp.pad(p, ((0, 0), (0, mp - m)))          # zero cols -> zero outputs
    return p, oh, ow, k, m, mp, tm


def _w_mat(w_oihw):
    cout, cin, kh, kw = w_oihw.shape
    # (Cout,Cin,KH,KW) -> (Cout, KH*KW*Cin) matching the patch K ordering.
    return jnp.transpose(w_oihw, (0, 2, 3, 1)).reshape(cout, kh * kw * cin)


# ---------------------------------------------------------------------------
# Layer wrappers
# ---------------------------------------------------------------------------
def _conv_lrelu(x_cbhw, w_oihw, stride, pad):
    cout = w_oihw.shape[0]
    b = x_cbhw.shape[1]
    p, oh, ow, k, m, mp, tm = _prep_patches(x_cbhw, w_oihw.shape[2],
                                            w_oihw.shape[3], stride, pad)
    wmat = _w_mat(w_oihw).astype(jnp.bfloat16)

    cost = pl.CostEstimate(flops=2 * mp * k * cout, transcendentals=0,
                           bytes_accessed=p.size * 2 + wmat.size * 2 + mp * cout * 2)
    out = pl.pallas_call(
        _mm_lrelu_kernel,
        out_shape=jax.ShapeDtypeStruct((cout, mp), jnp.bfloat16),
        grid=(mp // tm,),
        in_specs=[pl.BlockSpec((cout, k), lambda i: (0, 0)),
                  pl.BlockSpec((k, tm), lambda i: (0, i))],
        out_specs=pl.BlockSpec((cout, tm), lambda i: (0, i)),
        compiler_params=_mosaic_params(("parallel",)),
        cost_estimate=cost,
    )(wmat, p)
    return out[:, :m].reshape(cout, b, oh, ow)


def _conv_bn_lrelu(x_cbhw, w_oihw, gamma, beta, stride, pad):
    cout = w_oihw.shape[0]
    b = x_cbhw.shape[1]
    p, oh, ow, k, m, mp, tm = _prep_patches(x_cbhw, w_oihw.shape[2],
                                            w_oihw.shape[3], stride, pad)
    wmat = _w_mat(w_oihw).astype(jnp.bfloat16)
    g = gamma.reshape(cout, 1).astype(jnp.float32)
    be = beta.reshape(cout, 1).astype(jnp.float32)
    nt = mp // tm

    cost = pl.CostEstimate(
        flops=2 * mp * k * cout + 8 * mp * cout,
        transcendentals=nt * cout,
        bytes_accessed=p.size * 2 + wmat.size * 2 + mp * cout * 2)

    out = pl.pallas_call(
        functools.partial(_conv_bn_lrelu_kernel, m),
        out_shape=jax.ShapeDtypeStruct((cout, mp), jnp.bfloat16),
        grid=(2, nt),                       # (phase, m_tile), phase 0 then 1
        in_specs=[
            pl.BlockSpec((cout, k), lambda ph, i: (0, 0)),
            # Phase 1 does not use the patches: pin its block index to 0 so
            # only one redundant DMA is issued at the phase boundary.
            pl.BlockSpec((k, tm), lambda ph, i: (0, i * (1 - ph))),
            pl.BlockSpec((cout, 1), lambda ph, i: (0, 0)),
            pl.BlockSpec((cout, 1), lambda ph, i: (0, 0)),
        ],
        # Output is only produced in phase 1; keep block 0 resident through
        # phase 0 (never written back) and walk the tiles in phase 1.
        out_specs=pl.BlockSpec((cout, tm), lambda ph, i: (0, i * ph)),
        scratch_shapes=[
            pltpu.VMEM((nt, cout, tm), jnp.float32),   # VMEM-resident pre-BN y
            pltpu.VMEM((cout, 1), jnp.float32),        # per-channel sum
            pltpu.VMEM((cout, 1), jnp.float32),        # per-channel sum of sq
        ],
        compiler_params=_mosaic_params(("arbitrary", "arbitrary")),
        cost_estimate=cost,
    )(wmat, p, g, be)
    return out[:, :m].reshape(cout, b, oh, ow)


def _conv_sigmoid(x_cbhw, w_oihw, stride, pad):
    cout, cin, kh, kw = w_oihw.shape
    assert cout == 1
    b = x_cbhw.shape[1]
    p, oh, ow, k, m, mp, tm = _prep_patches(x_cbhw, kh, kw, stride, pad)
    # (1,Cin,KH,KW) -> (1, K) row; pad to 8 output rows (sublane-friendly MXU
    # output), only row 0 is real.
    cpad = _round_up(cout, 8)
    wmat = _w_mat(w_oihw)
    wmat = jnp.pad(wmat, ((0, cpad - cout), (0, 0))).astype(jnp.bfloat16)

    cost = pl.CostEstimate(flops=2 * mp * k * cpad, transcendentals=2 * mp,
                           bytes_accessed=p.size * 2 + wmat.size * 2 + mp * cpad * 4)
    out = pl.pallas_call(
        _mm_sigmoid_kernel,
        out_shape=jax.ShapeDtypeStruct((cpad, mp), jnp.float32),
        grid=(mp // tm,),
        in_specs=[pl.BlockSpec((cpad, k), lambda i: (0, 0)),
                  pl.BlockSpec((k, tm), lambda i: (0, i))],
        out_specs=pl.BlockSpec((cpad, tm), lambda i: (0, i)),
        compiler_params=_mosaic_params(("parallel",)),
        cost_estimate=cost,
    )(wmat, p)
    return out[:cout, :m].reshape(cout, b, oh, ow)


# ---------------------------------------------------------------------------
# Discriminator forward (DCGAN2.Discriminator)
# ---------------------------------------------------------------------------
def discriminator_forward(x_nchw, params):
    # NCHW -> (C, B, H, W) and bf16 up front: the large B*H*W extent stays on
    # the lane axis end-to-end and all patch materialization is bf16.
    x = jnp.transpose(x_nchw, (1, 0, 2, 3)).astype(jnp.bfloat16)
    x = _conv_lrelu(x, params["w1"], stride=2, pad=1)
    x = _conv_bn_lrelu(x, params["w2"], params["g2"], params["b2"], stride=2, pad=1)
    x = _conv_bn_lrelu(x, params["w3"], params["g3"], params["b3"], stride=2, pad=1)
    x = _conv_sigmoid(x, params["w4"], stride=1, pad=0)     # (1, B, 1, 1)
    b = x.shape[1]
    return x.reshape(1, b).T                                 # -> (B, 1)


def init_params(key, nc, ndf):
    k1, k2, k3, k4 = jax.random.split(key, 4)
    scale = 0.05
    return {
        "w1": scale * jax.random.normal(k1, (ndf, nc, 4, 4), jnp.float32),
        "w2": scale * jax.random.normal(k2, (ndf * 2, ndf, 4, 4), jnp.float32),
        "g2": jnp.ones((ndf * 2,), jnp.float32),   # BatchNorm2d default init
        "b2": jnp.zeros((ndf * 2,), jnp.float32),
        "w3": scale * jax.random.normal(k3, (ndf * 4, ndf * 2, 3, 3), jnp.float32),
        "g3": jnp.ones((ndf * 4,), jnp.float32),
        "b3": jnp.zeros((ndf * 4,), jnp.float32),
        "w4": scale * jax.random.normal(k4, (1, ndf * 4, 4, 4), jnp.float32),
    }
    # TODO(synk): PyTorch training-mode BatchNorm also updates running stats
    # as a side effect; that state mutation does not affect the forward output
    # and is omitted here.


if __name__ == "__main__":
    # 28x28 "MNIST-like" input so the final 4x4/s1/p0 conv collapses to 1x1
    # (28 -> 14 -> 7 -> 4 -> 1).
    B, nc, ndf, H, W = 4, 1, 8, 28, 28

    key = jax.random.PRNGKey(0)
    kx, kp = jax.random.split(key)
    x = jax.random.normal(kx, (B, nc, H, W), jnp.float32)
    params = init_params(kp, nc, ndf)

    fwd = jax.jit(discriminator_forward)
    out = jax.block_until_ready(fwd(x, params))

    assert out.shape == (B, 1), out.shape
    assert bool(jnp.all(jnp.isfinite(out)))
    assert bool(jnp.all((out >= 0.0) & (out <= 1.0)))
    print("KERNEL_OK")
</pallas_src>

<mosaic_0001>
module attributes {stable_mosaic.version = 11 : i64} {
  func.func @_mm_lrelu_kernel(%arg0: i32, %arg1: memref<8x16xbf16, #tpu.memory_space<vmem>>, %arg2: memref<16x896xbf16, #tpu.memory_space<vmem>>, %arg3: memref<8x896xbf16, #tpu.memory_space<vmem>>) attributes {dimension_semantics = [#tpu.dimension_semantics<parallel>], iteration_bounds = array<i64: 1>, scalar_prefetch = 0 : i64, scratch_operands = 0 : i64, tpu.core_type = #tpu.core_type<tc>, window_params = [{pipeline_mode = #tpu.pipeline_mode<synchronous>, transform_indices = @transform_0, window_bounds = array<i64: 8, 16>}, {transform_indices = @transform_1, window_bounds = array<i64: 16, 896>}, {transform_indices = @transform_2, window_bounds = array<i64: 8, 896>}]} {
    %c0 = arith.constant 0 : index
    %c0_0 = arith.constant 0 : index
    %0 = vector.load %arg1[%c0, %c0_0] : memref<8x16xbf16, #tpu.memory_space<vmem>>, vector<8x16xbf16>
    %c0_1 = arith.constant 0 : index
    %c0_2 = arith.constant 0 : index
    %1 = vector.load %arg2[%c0_1, %c0_2] : memref<16x896xbf16, #tpu.memory_space<vmem>>, vector<16x896xbf16>
    %cst = arith.constant dense<0.000000e+00> : vector<8x896xf32>
    %2 = tpu.matmul %0, %1, %cst {dimension_numbers = #tpu.dot_dimension_numbers<[1], [0], [0], [1], [0, 0, 1, 1], [], []>} : vector<8x16xbf16>, vector<16x896xbf16>, vector<8x896xf32> -> vector<8x896xf32>
    %cst_3 = arith.constant 0.000000e+00 : f32
    %3 = vector.broadcast %cst_3 : f32 to vector<8x896xf32>
    %4 = arith.cmpf oge, %2, %3 : vector<8x896xf32>
    %cst_4 = arith.constant 2.000000e-01 : f32
    %5 = vector.broadcast %cst_4 : f32 to vector<8x896xf32>
    %6 = arith.mulf %5, %2 : vector<8x896xf32>
    %7 = arith.select %4, %2, %6 : vector<8x896xi1>, vector<8x896xf32>
    %8 = arith.truncf %7 : vector<8x896xf32> to vector<8x896xbf16>
    %c0_5 = arith.constant 0 : index
    %c0_6 = arith.constant 0 : index
    %9 = vector.load %arg3[%c0_5, %c0_6] : memref<8x896xbf16, #tpu.memory_space<vmem>>, vector<8x896xbf16>
    tpu.vector_store %arg3[%c0_5, %c0_6], %8 {strides = array<i32>} : memref<8x896xbf16, #tpu.memory_space<vmem>>, vector<8x896xbf16>,
    return
  }
  func.func @transform_0(%arg0: i32) -> (i32, i32) {
    %c0_i32 = arith.constant 0 : i32
    %c0_i32_0 = arith.constant 0 : i32
    %c0_i32_1 = arith.constant 0 : i32
    return %c0_i32, %c0_i32_0 : i32, i32
  }
  func.func @transform_1(%arg0: i32) -> (i32, i32) {
    %c0_i32 = arith.constant 0 : i32
    %c0_i32_0 = arith.constant 0 : i32
    return %c0_i32, %arg0 : i32, i32
  }
  func.func @transform_2(%arg0: i32) -> (i32, i32) {
    %c0_i32 = arith.constant 0 : i32
    %c0_i32_0 = arith.constant 0 : i32
    return %c0_i32, %arg0 : i32, i32
  }
}

module attributes {stable_mosaic.version = 11 : i64} {
  func.func @_conv_bn_lrelu_kernel(%arg0: i32, %arg1: i32, %arg2: memref<16x128xbf16, #tpu.memory_space<vmem>>, %arg3: memref<128x256xbf16, #tpu.memory_space<vmem>>, %arg4: memref<16x1xf32, #tpu.memory_space<vmem>>, %arg5: memref<16x1xf32, #tpu.memory_space<vmem>>, %arg6: memref<16x256xbf16, #tpu.memory_space<vmem>>, %arg7: memref<1x16x256xf32, #tpu.memory_space<vmem>>, %arg8: memref<16x1xf32, #tpu.memory_space<vmem>>, %arg9: memref<16x1xf32, #tpu.memory_space<vmem>>) attributes {dimension_semantics = [#tpu.dimension_semantics<arbitrary>, #tpu.dimension_semantics<arbitrary>], iteration_bounds = array<i64: 2, 1>, scalar_prefetch = 0 : i64, scratch_operands = 3 : i64, tpu.core_type = #tpu.core_type<tc>, window_params = [{pipeline_mode = #tpu.pipeline_mode<synchronous>, transform_indices = @transform_0, window_bounds = array<i64: 16, 128>}, {transform_indices = @transform_1, window_bounds = array<i64: 128, 256>}, {pipeline_mode = #tpu.pipeline_mode<synchronous>, transform_indices = @transform_2, window_bounds = array<i64: 16, 1>}, {pipeline_mode = #tpu.pipeline_mode<synchronous>, transform_indices = @transform_3, window_bounds = array<i64: 16, 1>}, {transform_indices = @transform_4, window_bounds = array<i64: 16, 256>}]} {
    %c0_i32 = arith.constant 0 : i32
    %0 = arith.cmpi eq, %arg0, %c0_i32 : i32
    %c0_i32_0 = arith.constant 0 : i32
    %1 = arith.cmpi eq, %arg1, %c0_i32_0 : i32
    %2 = arith.andi %0, %1 : i1
    %3 = arith.extui %2 : i1 to i32
    %c0_i32_1 = arith.constant 0 : i32
    %4 = arith.cmpi ne, %3, %c0_i32_1 : i32
    scf.if %4 {
      %cst = arith.constant 0.000000e+00 : f32
      %11 = vector.broadcast %cst : f32 to vector<16x1xf32>
      %c0 = arith.constant 0 : index
      %c0_5 = arith.constant 0 : index
      %12 = vector.load %arg8[%c0, %c0_5] : memref<16x1xf32, #tpu.memory_space<vmem>>, vector<16x1xf32>
      tpu.vector_store %arg8[%c0, %c0_5], %11 {strides = array<i32>} : memref<16x1xf32, #tpu.memory_space<vmem>>, vector<16x1xf32>,
      %cst_6 = arith.constant 0.000000e+00 : f32
      %13 = vector.broadcast %cst_6 : f32 to vector<16x1xf32>
      %c0_7 = arith.constant 0 : index
      %c0_8 = arith.constant 0 : index
      %14 = vector.load %arg9[%c0_7, %c0_8] : memref<16x1xf32, #tpu.memory_space<vmem>>, vector<16x1xf32>
      tpu.vector_store %arg9[%c0_7, %c0_8], %13 {strides = array<i32>} : memref<16x1xf32, #tpu.memory_space<vmem>>, vector<16x1xf32>,
    } else {
    }
    %c0_i32_2 = arith.constant 0 : i32
    %5 = arith.cmpi eq, %arg0, %c0_i32_2 : i32
    %6 = arith.extui %5 : i1 to i32
    %c0_i32_3 = arith.constant 0 : i32
    %7 = arith.cmpi ne, %6, %c0_i32_3 : i32
    scf.if %7 {
      %c0 = arith.constant 0 : index
      %c0_5 = arith.constant 0 : index
      %11 = vector.load %arg2[%c0, %c0_5] : memref<16x128xbf16, #tpu.memory_space<vmem>>, vector<16x128xbf16>
      %c0_6 = arith.constant 0 : index
      %c0_7 = arith.constant 0 : index
      %12 = vector.load %arg3[%c0_6, %c0_7] : memref<128x256xbf16, #tpu.memory_space<vmem>>, vector<128x256xbf16>
      %cst = arith.constant dense<0.000000e+00> : vector<16x256xf32>
      %13 = tpu.matmul %11, %12, %cst {dimension_numbers = #tpu.dot_dimension_numbers<[1], [0], [0], [1], [0, 0, 1, 1], [], []>} : vector<16x128xbf16>, vector<128x256xbf16>, vector<16x256xf32> -> vector<16x256xf32>
      %14 = arith.index_cast %arg1 : i32 to index
      %c0_8 = arith.constant 0 : index
      %c0_9 = arith.constant 0 : index
      %15 = vector.load %arg7[%14, %c0_8, %c0_9] : memref<1x16x256xf32, #tpu.memory_space<vmem>>, vector<1x16x256xf32>
      %16 = vector.shape_cast %15 : vector<1x16x256xf32> to vector<16x256xf32>
      %17 = vector.shape_cast %13 : vector<16x256xf32> to vector<1x16x256xf32>
      tpu.vector_store %arg7[%14, %c0_8, %c0_9], %17 {strides = array<i32>} : memref<1x16x256xf32, #tpu.memory_space<vmem>>, vector<1x16x256xf32>,
      %c0_10 = arith.constant 0 : index
      %c0_11 = arith.constant 0 : index
      %18 = vector.load %arg8[%c0_10, %c0_11] : memref<16x1xf32, #tpu.memory_space<vmem>>, vector<16x1xf32>
      %cst_12 = arith.constant dense<0.000000e+00> : vector<16xf32>
      %19 = vector.multi_reduction <add>, %13, %cst_12 [1] : vector<16x256xf32> to vector<16xf32>
      %20 = vector.shape_cast %19 : vector<16xf32> to vector<16x1xf32>
      %21 = arith.addf %18, %20 : vector<16x1xf32>
      %c0_13 = arith.constant 0 : index
      %c0_14 = arith.constant 0 : index
      %22 = vector.load %arg8[%c0_13, %c0_14] : memref<16x1xf32, #tpu.memory_space<vmem>>, vector<16x1xf32>
      tpu.vector_store %arg8[%c0_13, %c0_14], %21 {strides = array<i32>} : memref<16x1xf32, #tpu.memory_space<vmem>>, vector<16x1xf32>,
      %c0_15 = arith.constant 0 : index
      %c0_16 = arith.constant 0 : index
      %23 = vector.load %arg9[%c0_15, %c0_16] : memref<16x1xf32, #tpu.memory_space<vmem>>, vector<16x1xf32>
      %24 = arith.mulf %13, %13 : vector<16x256xf32>
      %cst_17 = arith.constant dense<0.000000e+00> : vector<16xf32>
      %25 = vector.multi_reduction <add>, %24, %cst_17 [1] : vector<16x256xf32> to vector<16xf32>
      %26 = vector.shape_cast %25 : vector<16xf32> to vector<16x1xf32>
      %27 = arith.addf %23, %26 : vector<16x1xf32>
      %c0_18 = arith.constant 0 : index
      %c0_19 = arith.constant 0 : index
      %28 = vector.load %arg9[%c0_18, %c0_19] : memref<16x1xf32, #tpu.memory_space<vmem>>, vector<16x1xf32>
      tpu.vector_store %arg9[%c0_18, %c0_19], %27 {strides = array<i32>} : memref<16x1xf32, #tpu.memory_space<vmem>>, vector<16x1xf32>,
    } else {
    }
    %c1_i32 = arith.constant 1 : i32
    %8 = arith.cmpi eq, %arg0, %c1_i32 : i32
    %9 = arith.extui %8 : i1 to i32
    %c0_i32_4 = arith.constant 0 : i32
    %10 = arith.cmpi ne, %9, %c0_i32_4 : i32
    scf.if %10 {
      %c0 = arith.constant 0 : index
      %c0_5 = arith.constant 0 : index
      %11 = vector.load %arg8[%c0, %c0_5] : memref<16x1xf32, #tpu.memory_space<vmem>>, vector<16x1xf32>
      %cst = arith.constant 0.00510204071 : f32
      %12 = vector.broadcast %cst : f32 to vector<16x1xf32>
      %13 = arith.mulf %11, %12 : vector<16x1xf32>
      %c0_6 = arith.constant 0 : index
      %c0_7 = arith.constant 0 : index
      %14 = vector.load %arg9[%c0_6, %c0_7] : memref<16x1xf32, #tpu.memory_space<vmem>>, vector<16x1xf32>
      %cst_8 = arith.constant 0.00510204071 : f32
      %15 = vector.broadcast %cst_8 : f32 to vector<16x1xf32>
      %16 = arith.mulf %14, %15 : vector<16x1xf32>
      %17 = arith.mulf %13, %13 : vector<16x1xf32>
      %18 = arith.subf %16, %17 : vector<16x1xf32>
      %cst_9 = arith.constant 0.000000e+00 : f32
      %19 = vector.broadcast %cst_9 : f32 to vector<16x1xf32>
      %20 = arith.maximumf %18, %19 : vector<16x1xf32>
      %c0_10 = arith.constant 0 : index
      %c0_11 = arith.constant 0 : index
      %21 = vector.load %arg4[%c0_10, %c0_11] : memref<16x1xf32, #tpu.memory_space<vmem>>, vector<16x1xf32>
      %cst_12 = arith.constant 9.99999974E-6 : f32
      %22 = vector.broadcast %cst_12 : f32 to vector<16x1xf32>
      %23 = arith.addf %20, %22 : vector<16x1xf32>
      %24 = math.rsqrt %23 : vector<16x1xf32>
      %25 = arith.mulf %21, %24 : vector<16x1xf32>
      %c0_13 = arith.constant 0 : index
      %c0_14 = arith.constant 0 : index
      %26 = vector.load %arg5[%c0_13, %c0_14] : memref<16x1xf32, #tpu.memory_space<vmem>>, vector<16x1xf32>
      %27 = arith.mulf %13, %25 : vector<16x1xf32>
      %28 = arith.subf %26, %27 : vector<16x1xf32>
      %29 = arith.index_cast %arg1 : i32 to index
      %c0_15 = arith.constant 0 : index
      %c0_16 = arith.constant 0 : index
      %30 = vector.load %arg7[%29, %c0_15, %c0_16] : memref<1x16x256xf32, #tpu.memory_space<vmem>>, vector<1x16x256xf32>
      %31 = vector.shape_cast %30 : vector<1x16x256xf32> to vector<16x256xf32>
      %32 = vector.broadcast %25 : vector<16x1xf32> to vector<16x256xf32>
      %33 = arith.mulf %31, %32 : vector<16x256xf32>
      %34 = vector.broadcast %28 : vector<16x1xf32> to vector<16x256xf32>
      %35 = arith.addf %33, %34 : vector<16x256xf32>
      %cst_17 = arith.constant 0.000000e+00 : f32
      %36 = vector.broadcast %cst_17 : f32 to vector<16x256xf32>
      %37 = arith.cmpf oge, %35, %36 : vector<16x256xf32>
      %cst_18 = arith.constant 2.000000e-01 : f32
      %38 = vector.broadcast %cst_18 : f32 to vector<16x256xf32>
      %39 = arith.mulf %38, %35 : vector<16x256xf32>
      %40 = arith.select %37, %35, %39 : vector<16x256xi1>, vector<16x256xf32>
      %41 = arith.truncf %40 : vector<16x256xf32> to vector<16x256xbf16>
      %c0_19 = arith.constant 0 : index
      %c0_20 = arith.constant 0 : index
      %42 = vector.load %arg6[%c0_19, %c0_20] : memref<16x256xbf16, #tpu.memory_space<vmem>>, vector<16x256xbf16>
      tpu.vector_store %arg6[%c0_19, %c0_20], %41 {strides = array<i32>} : memref<16x256xbf16, #tpu.memory_space<vmem>>, vector<16x256xbf16>,
    } else {
    }
    return
  }
  func.func @transform_0(%arg0: i32, %arg1: i32) -> (i32, i32) {
    %c0_i32 = arith.constant 0 : i32
    %c0_i32_0 = arith.constant 0 : i32
    %c0_i32_1 = arith.constant 0 : i32
    return %c0_i32, %c0_i32_0 : i32, i32
  }
  func.func @transform_1(%arg0: i32, %arg1: i32) -> (i32, i32) {
    %c1_i32 = arith.constant 1 : i32
    %0 = arith.subi %c1_i32, %arg0 : i32
    %1 = arith.muli %arg1, %0 : i32
    %c0_i32 = arith.constant 0 : i32
    %c0_i32_0 = arith.constant 0 : i32
    return %c0_i32, %1 : i32, i32
  }
  func.func @transform_2(%arg0: i32, %arg1: i32) -> (i32, i32) {
    %c0_i32 = arith.constant 0 : i32
    %c0_i32_0 = arith.constant 0 : i32
    %c0_i32_1 = arith.constant 0 : i32
    return %c0_i32, %c0_i32_0 : i32, i32
  }
  func.func @transform_3(%arg0: i32, %arg1: i32) -> (i32, i32) {
    %c0_i32 = arith.constant 0 : i32
    %c0_i32_0 = arith.constant 0 : i32
    %c0_i32_1 = arith.constant 0 : i32
    return %c0_i32, %c0_i32_0 : i32, i32
  }
  func.func @transform_4(%arg0: i32, %arg1: i32) -> (i32, i32) {
    %0 = arith.muli %arg1, %arg0 : i32
    %c0_i32 = arith.constant 0 : i32
    %c0_i32_0 = arith.constant 0 : i32
    return %c0_i32, %0 : i32, i32
  }
}

module attributes {stable_mosaic.version = 11 : i64} {
  func.func @_conv_bn_lrelu_kernel(%arg0: i32, %arg1: i32, %arg2: memref<32x144xbf16, #tpu.memory_space<vmem>>, %arg3: memref<144x128xbf16, #tpu.memory_space<vmem>>, %arg4: memref<32x1xf32, #tpu.memory_space<vmem>>, %arg5: memref<32x1xf32, #tpu.memory_space<vmem>>, %arg6: memref<32x128xbf16, #tpu.memory_space<vmem>>, %arg7: memref<1x32x128xf32, #tpu.memory_space<vmem>>, %arg8: memref<32x1xf32, #tpu.memory_space<vmem>>, %arg9: memref<32x1xf32, #tpu.memory_space<vmem>>) attributes {dimension_semantics = [#tpu.dimension_semantics<arbitrary>, #tpu.dimension_semantics<arbitrary>], iteration_bounds = array<i64: 2, 1>, scalar_prefetch = 0 : i64, scratch_operands = 3 : i64, tpu.core_type = #tpu.core_type<tc>, window_params = [{pipeline_mode = #tpu.pipeline_mode<synchronous>, transform_indices = @transform_0, window_bounds = array<i64: 32, 144>}, {transform_indices = @transform_1, window_bounds = array<i64: 144, 128>}, {pipeline_mode = #tpu.pipeline_mode<synchronous>, transform_indices = @transform_2, window_bounds = array<i64: 32, 1>}, {pipeline_mode = #tpu.pipeline_mode<synchronous>, transform_indices = @transform_3, window_bounds = array<i64: 32, 1>}, {transform_indices = @transform_4, window_bounds = array<i64: 32, 128>}]} {
    %c0_i32 = arith.constant 0 : i32
    %0 = arith.cmpi eq, %arg0, %c0_i32 : i32
    %c0_i32_0 = arith.constant 0 : i32
    %1 = arith.cmpi eq, %arg1, %c0_i32_0 : i32
    %2 = arith.andi %0, %1 : i1
    %3 = arith.extui %2 : i1 to i32
    %c0_i32_1 = arith.constant 0 : i32
    %4 = arith.cmpi ne, %3, %c0_i32_1 : i32
    scf.if %4 {
      %cst = arith.constant 0.000000e+00 : f32
      %11 = vector.broadcast %cst : f32 to vector<32x1xf32>
      %c0 = arith.constant 0 : index
      %c0_5 = arith.constant 0 : index
      %12 = vector.load %arg8[%c0, %c0_5] : memref<32x1xf32, #tpu.memory_space<vmem>>, vector<32x1xf32>
      tpu.vector_store %arg8[%c0, %c0_5], %11 {strides = array<i32>} : memref<32x1xf32, #tpu.memory_space<vmem>>, vector<32x1xf32>,
      %cst_6 = arith.constant 0.000000e+00 : f32
      %13 = vector.broadcast %cst_6 : f32 to vector<32x1xf32>
      %c0_7 = arith.constant 0 : index
      %c0_8 = arith.constant 0 : index
      %14 = vector.load %arg9[%c0_7, %c0_8] : memref<32x1xf32, #tpu.memory_space<vmem>>, vector<32x1xf32>
      tpu.vector_store %arg9[%c0_7, %c0_8], %13 {strides = array<i32>} : memref<32x1xf32, #tpu.memory_space<vmem>>, vector<32x1xf32>,
    } else {
    }
    %c0_i32_2 = arith.constant 0 : i32
    %5 = arith.cmpi eq, %arg0, %c0_i32_2 : i32
    %6 = arith.extui %5 : i1 to i32
    %c0_i32_3 = arith.constant 0 : i32
    %7 = arith.cmpi ne, %6, %c0_i32_3 : i32
    scf.if %7 {
      %c0 = arith.constant 0 : index
      %c0_5 = arith.constant 0 : index
      %11 = vector.load %arg2[%c0, %c0_5] : memref<32x144xbf16, #tpu.memory_space<vmem>>, vector<32x144xbf16>
      %c0_6 = arith.constant 0 : index
      %c0_7 = arith.constant 0 : index
      %12 = vector.load %arg3[%c0_6, %c0_7] : memref<144x128xbf16, #tpu.memory_space<vmem>>, vector<144x128xbf16>
      %cst = arith.constant dense<0.000000e+00> : vector<32x128xf32>
      %13 = tpu.matmul %11, %12, %cst {dimension_numbers = #tpu.dot_dimension_numbers<[1], [0], [0], [1], [0, 0, 1, 1], [], []>} : vector<32x144xbf16>, vector<144x128xbf16>, vector<32x128xf32> -> vector<32x128xf32>
      %14 = arith.index_cast %arg1 : i32 to index
      %c0_8 = arith.constant 0 : index
      %c0_9 = arith.constant 0 : index
      %15 = vector.load %arg7[%14, %c0_8, %c0_9] : memref<1x32x128xf32, #tpu.memory_space<vmem>>, vector<1x32x128xf32>
      %16 = vector.shape_cast %15 : vector<1x32x128xf32> to vector<32x128xf32>
      %17 = vector.shape_cast %13 : vector<32x128xf32> to vector<1x32x128xf32>
      tpu.vector_store %arg7[%14, %c0_8, %c0_9], %17 {strides = array<i32>} : memref<1x32x128xf32, #tpu.memory_space<vmem>>, vector<1x32x128xf32>,
      %c0_10 = arith.constant 0 : index
      %c0_11 = arith.constant 0 : index
      %18 = vector.load %arg8[%c0_10, %c0_11] : memref<32x1xf32, #tpu.memory_space<vmem>>, vector<32x1xf32>
      %cst_12 = arith.constant dense<0.000000e+00> : vector<32xf32>
      %19 = vector.multi_reduction <add>, %13, %cst_12 [1] : vector<32x128xf32> to vector<32xf32>
      %20 = vector.shape_cast %19 : vector<32xf32> to vector<32x1xf32>
      %21 = arith.addf %18, %20 : vector<32x1xf32>
      %c0_13 = arith.constant 0 : index
      %c0_14 = arith.constant 0 : index
      %22 = vector.load %arg8[%c0_13, %c0_14] : memref<32x1xf32, #tpu.memory_space<vmem>>, vector<32x1xf32>
      tpu.vector_store %arg8[%c0_13, %c0_14], %21 {strides = array<i32>} : memref<32x1xf32, #tpu.memory_space<vmem>>, vector<32x1xf32>,
      %c0_15 = arith.constant 0 : index
      %c0_16 = arith.constant 0 : index
      %23 = vector.load %arg9[%c0_15, %c0_16] : memref<32x1xf32, #tpu.memory_space<vmem>>, vector<32x1xf32>
      %24 = arith.mulf %13, %13 : vector<32x128xf32>
      %cst_17 = arith.constant dense<0.000000e+00> : vector<32xf32>
      %25 = vector.multi_reduction <add>, %24, %cst_17 [1] : vector<32x128xf32> to vector<32xf32>
      %26 = vector.shape_cast %25 : vector<32xf32> to vector<32x1xf32>
      %27 = arith.addf %23, %26 : vector<32x1xf32>
      %c0_18 = arith.constant 0 : index
      %c0_19 = arith.constant 0 : index
      %28 = vector.load %arg9[%c0_18, %c0_19] : memref<32x1xf32, #tpu.memory_space<vmem>>, vector<32x1xf32>
      tpu.vector_store %arg9[%c0_18, %c0_19], %27 {strides = array<i32>} : memref<32x1xf32, #tpu.memory_space<vmem>>, vector<32x1xf32>,
    } else {
    }
    %c1_i32 = arith.constant 1 : i32
    %8 = arith.cmpi eq, %arg0, %c1_i32 : i32
    %9 = arith.extui %8 : i1 to i32
    %c0_i32_4 = arith.constant 0 : i32
    %10 = arith.cmpi ne, %9, %c0_i32_4 : i32
    scf.if %10 {
      %c0 = arith.constant 0 : index
      %c0_5 = arith.constant 0 : index
      %11 = vector.load %arg8[%c0, %c0_5] : memref<32x1xf32, #tpu.memory_space<vmem>>, vector<32x1xf32>
      %cst = arith.constant 1.562500e-02 : f32
      %12 = vector.broadcast %cst : f32 to vector<32x1xf32>
      %13 = arith.mulf %11, %12 : vector<32x1xf32>
      %c0_6 = arith.constant 0 : index
      %c0_7 = arith.constant 0 : index
      %14 = vector.load %arg9[%c0_6, %c0_7] : memref<32x1xf32, #tpu.memory_space<vmem>>, vector<32x1xf32>
      %cst_8 = arith.constant 1.562500e-02 : f32
      %15 = vector.broadcast %cst_8 : f32 to vector<32x1xf32>
      %16 = arith.mulf %14, %15 : vector<32x1xf32>
      %17 = arith.mulf %13, %13 : vector<32x1xf32>
      %18 = arith.subf %16, %17 : vector<32x1xf32>
      %cst_9 = arith.constant 0.000000e+00 : f32
      %19 = vector.broadcast %cst_9 : f32 to vector<32x1xf32>
      %20 = arith.maximumf %18, %19 : vector<32x1xf32>
      %c0_10 = arith.constant 0 : index
      %c0_11 = arith.constant 0 : index
      %21 = vector.load %arg4[%c0_10, %c0_11] : memref<32x1xf32, #tpu.memory_space<vmem>>, vector<32x1xf32>
      %cst_12 = arith.constant 9.99999974E-6 : f32
      %22 = vector.broadcast %cst_12 : f32 to vector<32x1xf32>
      %23 = arith.addf %20, %22 : vector<32x1xf32>
      %24 = math.rsqrt %23 : vector<32x1xf32>
      %25 = arith.mulf %21, %24 : vector<32x1xf32>
      %c0_13 = arith.constant 0 : index
      %c0_14 = arith.constant 0 : index
      %26 = vector.load %arg5[%c0_13, %c0_14] : memref<32x1xf32, #tpu.memory_space<vmem>>, vector<32x1xf32>
      %27 = arith.mulf %13, %25 : vector<32x1xf32>
      %28 = arith.subf %26, %27 : vector<32x1xf32>
      %29 = arith.index_cast %arg1 : i32 to index
      %c0_15 = arith.constant 0 : index
      %c0_16 = arith.constant 0 : index
      %30 = vector.load %arg7[%29, %c0_15, %c0_16] : memref<1x32x128xf32, #tpu.memory_space<vmem>>, vector<1x32x128xf32>
      %31 = vector.shape_cast %30 : vector<1x32x128xf32> to vector<32x128xf32>
      %32 = vector.broadcast %25 : vector<32x1xf32> to vector<32x128xf32>
      %33 = arith.mulf %31, %32 : vector<32x128xf32>
      %34 = vector.broadcast %28 : vector<32x1xf32> to vector<32x128xf32>
      %35 = arith.addf %33, %34 : vector<32x128xf32>
      %cst_17 = arith.constant 0.000000e+00 : f32
      %36 = vector.broadcast %cst_17 : f32 to vector<32x128xf32>
      %37 = arith.cmpf oge, %35, %36 : vector<32x128xf32>
      %cst_18 = arith.constant 2.000000e-01 : f32
      %38 = vector.broadcast %cst_18 : f32 to vector<32x128xf32>
      %39 = arith.mulf %38, %35 : vector<32x128xf32>
      %40 = arith.select %37, %35, %39 : vector<32x128xi1>, vector<32x128xf32>
      %41 = arith.truncf %40 : vector<32x128xf32> to vector<32x128xbf16>
      %c0_19 = arith.constant 0 : index
      %c0_20 = arith.constant 0 : index
      %42 = vector.load %arg6[%c0_19, %c0_20] : memref<32x128xbf16, #tpu.memory_space<vmem>>, vector<32x128xbf16>
      tpu.vector_store %arg6[%c0_19, %c0_20], %41 {strides = array<i32>} : memref<32x128xbf16, #tpu.memory_space<vmem>>, vector<32x128xbf16>,
    } else {
    }
    return
  }
  func.func @transform_0(%arg0: i32, %arg1: i32) -> (i32, i32) {
    %c0_i32 = arith.constant 0 : i32
    %c0_i32_0 = arith.constant 0 : i32
    %c0_i32_1 = arith.constant 0 : i32
    return %c0_i32, %c0_i32_0 : i32, i32
  }
  func.func @transform_1(%arg0: i32, %arg1: i32) -> (i32, i32) {
    %c1_i32 = arith.constant 1 : i32
    %0 = arith.subi %c1_i32, %arg0 : i32
    %1 = arith.muli %arg1, %0 : i32
    %c0_i32 = arith.constant 0 : i32
    %c0_i32_0 = arith.constant 0 : i32
    return %c0_i32, %1 : i32, i32
  }
  func.func @transform_2(%arg0: i32, %arg1: i32) -> (i32, i32) {
    %c0_i32 = arith.constant 0 : i32
    %c0_i32_0 = arith.constant 0 : i32
    %c0_i32_1 = arith.constant 0 : i32
    return %c0_i32, %c0_i32_0 : i32, i32
  }
  func.func @transform_3(%arg0: i32, %arg1: i32) -> (i32, i32) {
    %c0_i32 = arith.constant 0 : i32
    %c0_i32_0 = arith.constant 0 : i32
    %c0_i32_1 = arith.constant 0 : i32
    return %c0_i32, %c0_i32_0 : i32, i32
  }
  func.func @transform_4(%arg0: i32, %arg1: i32) -> (i32, i32) {
    %0 = arith.muli %arg1, %arg0 : i32
    %c0_i32 = arith.constant 0 : i32
    %c0_i32_0 = arith.constant 0 : i32
    return %c0_i32, %0 : i32, i32
  }
}

module attributes {stable_mosaic.version = 11 : i64} {
  func.func @_mm_sigmoid_kernel(%arg0: i32, %arg1: memref<8x512xbf16, #tpu.memory_space<vmem>>, %arg2: memref<512x128xbf16, #tpu.memory_space<vmem>>, %arg3: memref<8x128xf32, #tpu.memory_space<vmem>>) attributes {dimension_semantics = [#tpu.dimension_semantics<parallel>], iteration_bounds = array<i64: 1>, scalar_prefetch = 0 : i64, scratch_operands = 0 : i64, tpu.core_type = #tpu.core_type<tc>, window_params = [{pipeline_mode = #tpu.pipeline_mode<synchronous>, transform_indices = @transform_0, window_bounds = array<i64: 8, 512>}, {transform_indices = @transform_1, window_bounds = array<i64: 512, 128>}, {transform_indices = @transform_2, window_bounds = array<i64: 8, 128>}]} {
    %c0 = arith.constant 0 : index
    %c0_0 = arith.constant 0 : index
    %0 = vector.load %arg1[%c0, %c0_0] : memref<8x512xbf16, #tpu.memory_space<vmem>>, vector<8x512xbf16>
    %c0_1 = arith.constant 0 : index
    %c0_2 = arith.constant 0 : index
    %1 = vector.load %arg2[%c0_1, %c0_2] : memref<512x128xbf16, #tpu.memory_space<vmem>>, vector<512x128xbf16>
    %cst = arith.constant dense<0.000000e+00> : vector<8x128xf32>
    %2 = tpu.matmul %0, %1, %cst {dimension_numbers = #tpu.dot_dimension_numbers<[1], [0], [0], [1], [0, 0, 1, 1], [], []>} : vector<8x512xbf16>, vector<512x128xbf16>, vector<8x128xf32> -> vector<8x128xf32>
    %cst_3 = arith.constant 0.000000e+00 : f32
    %3 = vector.broadcast %cst_3 : f32 to vector<8x128xf32>
    %4 = arith.subf %3, %2 : vector<8x128xf32>
    %5 = math.exp %4 : vector<8x128xf32>
    %cst_4 = arith.constant 1.000000e+00 : f32
    %6 = vector.broadcast %cst_4 : f32 to vector<8x128xf32>
    %7 = arith.addf %6, %5 : vector<8x128xf32>
    %8 = tpu.reciprocal %7 {approx = true} : vector<8x128xf32> -> vector<8x128xf32>
    %cst_5 = arith.constant 1.000000e+00 : f32
    %9 = vector.broadcast %cst_5 : f32 to vector<8x128xf32>
    %10 = arith.minimumf %8, %9 : vector<8x128xf32>
    %c0_6 = arith.constant 0 : index
    %c0_7 = arith.constant 0 : index
    %11 = vector.load %arg3[%c0_6, %c0_7] : memref<8x128xf32, #tpu.memory_space<vmem>>, vector<8x128xf32>
    tpu.vector_store %arg3[%c0_6, %c0_7], %10 {strides = array<i32>} : memref<8x128xf32, #tpu.memory_space<vmem>>, vector<8x128xf32>,
    return
  }
  func.func @transform_0(%arg0: i32) -> (i32, i32) {
    %c0_i32 = arith.constant 0 : i32
    %c0_i32_0 = arith.constant 0 : i32
    %c0_i32_1 = arith.constant 0 : i32
    return %c0_i32, %c0_i32_0 : i32, i32
  }
  func.func @transform_1(%arg0: i32) -> (i32, i32) {
    %c0_i32 = arith.constant 0 : i32
    %c0_i32_0 = arith.constant 0 : i32
    return %c0_i32, %arg0 : i32, i32
  }
  func.func @transform_2(%arg0: i32) -> (i32, i32) {
    %c0_i32 = arith.constant 0 : i32
    %c0_i32_0 = arith.constant 0 : i32
    return %c0_i32, %arg0 : i32, i32
  }
}

</mosaic_0001>

<bundles_post_ra>
// kernel: discriminator_forward.4
= control target key start
LH: loop header
LB: loop body
LE: loop exit
PB: predicated region body
PF: predicated region fallthrough
CT: control target
= control target key end

     0   :  { %v322_v1 = vmov 0   ;;  %vm57_vm0 = vcmask 130048   ;;  %v323_v8 = vmov 0.0   ;;  %vm324_vm1 = vmmov 0   ;;  %s380_s1 = inlined_call_operand.vmem [shape: bf16[16,896], index: 1, kind: input, shape index: {}]   ;;  %s381_s0 = inlined_call_operand.vmem [shape: bf16[8,16], index: 0, kind: input, shape index: {}]   ;;  %s382_s2 = inlined_call_operand.vmem [shape: bf16[8,896], index: 2, kind: output, shape index: {}]  }
   0x1   :  { %v312_v0 = vld [vmem:[%s380_s1 + $0x4] ss:$28 sps:$4 sm:$0xff]   ;;  %93 = vmatprep.mubr.bf16.mxu0 %v322_v1  ;;  %134 = vmatprep.mubr.bf16.mxu1 %v322_v1  ;;  %v314_v2 = vld [vmem:[%s380_s1 + $0xc] ss:$28 sps:$4 sm:$0xff]   ;;  %v320_v7 = vld [vmem:[%s380_s1 + $0x14] ss:$28 sps:$4 sm:$0xff]  }
   0x2   :  { %75 = vmatprep.subr.bf16.mxu0 %v312_v0  ;;  %v316_v3 = vld [vmem:[%s380_s1] ss:$28 sps:$4 sm:$0xff]   ;;  %v317_v4 = vld [vmem:[%s380_s1 + $0x8] ss:$28 sps:$4 sm:$0xff]   ;;  %116 = vmatprep.subr.bf16.mxu1 %v314_v2  ;;  %v318_v6 = vld [vmem:[%s380_s1 + $0x10] ss:$28 sps:$4 sm:$0xff]  }
   0x3   :  { %v12_v5 = vld [vmem:[%s381_s0] sm:$0xf]  ;;  %76 = vmatpush1.bf16.msra.mxu0 %v316_v3  ;;  %117 = vmatpush1.bf16.msra.mxu1 %v317_v4  ;;  %v321_v9 = vld [vmem:[%s380_s1 + $0x18] ss:$28 sps:$4 sm:$0xff]  }
   0x4   :  { %303 = vmatprep.subr.bf16.mxu1 %v323_v8  ;;  %157 = vmatprep.subr.bf16.mxu0 %v320_v7 }
   0x6   :  { %289 = vmatmul.mubr.msk.bf16.vlgmr.msra.gmra.mxu0 %vm57_vm0, %v12_v5  ;;  %290 = vmatmul.mubr.msk.bf16.vlgmr.msra.gmra.mxu1 %vm57_vm0, %v12_v5 }
   0x7   :  { %158 = vmatpush1.bf16.msra.mxu0 %v318_v6  ;;  %304 = vmatpush3.bf16.msra.mxu1 %v321_v9 }
   0x8   :  { %175 = vmatprep.mubr.bf16.mxu0 %v322_v1  ;;  %305 = vmatprep.mubr.msk.bf16.mxu1 %vm324_vm1, %v323_v8 }
   0xe   :  { %291 = vmatmul.mubr.msk.bf16.vlgmr.msra.gmra.mxu0 %vm57_vm0, %v12_v5  ;;  %306 = vmatmul.mubr.msk.bf16.vlgmr.msra.gmra.mxu1 %vm57_vm0, %v12_v5 }
  0xc6   :  { %v95_v10 = vpop.f32.mrf.mxu0  ;;  %v136_v11 = vpop.f32.mrf.mxu1 }
  0xc7   :  { %v231_v12 = vmul.f32 0.2, %v95_v10  ;;  %vm224_vm2 = vcmp.ge.f32.partialorder %v95_v10, 0.0  ;;  %v233_v13 = vmul.f32 0.2, %v136_v11  ;;  %vm226_vm3 = vcmp.ge.f32.partialorder %v136_v11, 0.0 }
  0xc8   :  { %v97_v14 = vpop.f32.mrf.mxu0  ;;  %v138_v15 = vpop.f32.mrf.mxu1 }
  0xc9   :  { %vm225_vm4 = vcmp.ge.f32.partialorder %v97_v14, 0.0  ;;  %v232_v16 = vmul.f32 0.2, %v97_v14  ;;  %vm227_vm5 = vcmp.ge.f32.partialorder %v138_v15, 0.0  ;;  %v234_v17 = vmul.f32 0.2, %v138_v15 }
  0xca   :  { %v99_v18 = vpop.f32.mrf.mxu0  ;;  %v140_v19 = vpop.f32.mrf.mxu1  ;;  %v238_v20 = vsel %vm224_vm2, %v95_v10, %v231_v12  ;;  %v240_v22 = vsel %vm226_vm3, %v136_v11, %v233_v13 }
  0xcb   :  { %v239_v21 = vsel %vm225_vm4, %v97_v14, %v232_v16  ;;  %v241_v24 = vsel %vm227_vm5, %v138_v15, %v234_v17 }
  0xcc   :  { %v297_v23 = vpack.c.bf16 %v239_v21, %v238_v20  ;;  %v100_v25 = vpop.f32.mrf.mxu0  ;;  %v141_v26 = vpop.f32.mrf.mxu1  ;;  %v298_v27 = vpack.c.bf16 %v241_v24, %v240_v22 }
  0xce   :  { %274 = vst [vmem:[%s382_s2] sm:$0xff] %v297_v23  ;;  %v177_v28 = vpop.f32.mrf.mxu0  ;;  %v218_v29 = vpop.f32.mrf.mxu1  ;;  %275 = vst [vmem:[%s382_s2 + $0x8] sm:$0xff] %v298_v27 }
  0xcf   :  { %v235_v30 = vmul.f32 0.2, %v177_v28  ;;  %vm230_vm6 = vcmp.ge.f32.partialorder %v218_v29, 0.0  ;;  %v237_v31 = vmul.f32 0.2, %v218_v29  ;;  %vm228_vm7 = vcmp.ge.f32.partialorder %v177_v28, 0.0 }
  0xd0   :  { %v179_v32 = vpop.f32.mrf.mxu0  ;;  %v307_v33 = vpop.f32.mrf.mxu1 }
  0xd1   :  { %v244_v34 = vsel %vm230_vm6, %v218_v29, %v237_v31  ;;  %vm229_vm8 = vcmp.ge.f32.partialorder %v179_v32, 0.0  ;;  %v236_v35 = vmul.f32 0.2, %v179_v32  ;;  %v242_v39 = vsel %vm228_vm7, %v177_v28, %v235_v30 }
  0xd2   :  { %v300_v36 = vpack.c.bf16 %v244_v34, %v244_v34  ;;  %v181_v37 = vpop.f32.mrf.mxu0  ;;  %v221_v38 = vpop.f32.mrf.mxu1 }
  0xd3   :  { %v243_v40 = vsel %vm229_vm8, %v179_v32, %v236_v35 }
  0xd4   :  { %277 = vst [vmem:[%s382_s2 + $0x18] sm:$0xf] %v300_v36  ;;  %v299_v41 = vpack.c.bf16 %v243_v40, %v242_v39  ;;  %v182_v42 = vpop.f32.mrf.mxu0  ;;  %v308_v43 = vpop.f32.mrf.mxu1 }
  0xd6   :  { %276 = vst [vmem:[%s382_s2 + $0x10] sm:$0xff] %v299_v41 }

// kernel: discriminator_forward.5
= control target key start
LH: loop header
LB: loop body
LE: loop exit
PB: predicated region body
PF: predicated region fallthrough
CT: control target
= control target key end

     0   :  { %s740_s15 = smov 0   ;;  %s742_s16 = smov 0   ;;  %s841_s0 = inlined_call_operand.vmem [shape: bf16[16,128], index: 0, kind: input, shape index: {}]   ;;  %s842_s1 = inlined_call_operand.vmem [shape: bf16[128,256], index: 1, kind: input, shape index: {}]   ;;  %s843_s2 = inlined_call_operand.vmem [shape: f32[16,1], index: 2, kind: input, shape index: {}]   ;;  %s844_s3 = inlined_call_operand.vmem [shape: f32[16,1], index: 3, kind: input, shape index: {}]   ;;  %s845_s4 = inlined_call_operand.vmem [shape: bf16[16,256], index: 4, kind: output, shape index: {}]  }
   0x1   :  { %s744_s17 = smov 0  }
   0x2 LB: > { %s26_s18 = sadd.s32 1, %s706_s16  ;;  %p600_p0 = scmp.ge.s32.totalorder %s710_s17, 1  ;;  %s710_s17 = sphi %s744_s17, %s14_s17   ;;  %s706_s16 = sphi %s742_s16, %s847_s16   ;;  %s702_s15 = sphi %s740_s15, %s846_s15  }
   0x3   : > { %p28_p1 = scmp.ge.s32.totalorder %s26_s18, 2  ;;  %p185_p2 = scmp.lt.s32.totalorder %s710_s17, 3 }
   0x5   : > { %s849_s18 = smov (%p28_p1, %s26_s18), 0  ;;  %p186_p3 = pnand %p600_p0, %p185_p2 }
   0x6   : > { %p233_p4 = scmp.eq.s32.totalorder (!%p186_p3), %s702_s15, 0 }
   0x7   : > { %189 = sbr.rel (%p186_p3) target bundleno = 575 (0x23f), region = 36 }
   0xc   : > { %238 = sbr.rel (!%p233_p4) target bundleno = 17 (0x11), region = 40  ;;  %vm239_vm0 = vcmask (%p233_p4), 7168   ;;  %v712_v0 = vmov (%p233_p4), 0.0  }
   0xd   : > { %240 = vst.msk [vmem:[#allocation3] sm:$0xff] (%p233_p4), %vm239_vm0, %v712_v0  ;;  %241 = vst.msk [vmem:[#allocation3 + $0x8] sm:$0xff] (%p233_p4), %vm239_vm0, %v712_v0 }
   0xe   : > { %242 = vst.msk [vmem:[#allocation4] sm:$0xff] (%p233_p4), %vm239_vm0, %v712_v0  ;;  %243 = vst.msk [vmem:[#allocation4 + $0x8] sm:$0xff] (%p233_p4), %vm239_vm0, %v712_v0 }
  0x11 PF: > { %p602_p5 = scmp.ne.s32.totalorder %s702_s15, 0 }
  0x13   : > { %246 = sbr.rel (%p602_p5) target bundleno = 401 (0x191), region = 44 }
  0x18   : > { %v657_v1 = vld [vmem:[%s842_s1 + $0x74] ss:$8 sps:$4 sm:$0xff]   ;;  %v659_v2 = vld [vmem:[%s842_s1 + $0x70] ss:$8 sps:$4 sm:$0xff]   ;;  %v713_v3 = vmov 0   ;;  %v681_v18 = vld [vmem:[%s841_s0] sm:$0xff]  }
  0x19   : > { %383 = vmatprep.mubr.bf16.mxu0 %v713_v3  ;;  %351 = vmatprep.subr.bf16.mxu0 %v657_v1  ;;  %v660_v4 = vld [vmem:[%s842_s1 + $0x64] ss:$8 sps:$4 sm:$0xff]   ;;  %v662_v5 = vld [vmem:[%s842_s1 + $0x60] ss:$8 sps:$4 sm:$0xff]   ;;  %v663_v6 = vld [vmem:[%s842_s1 + $0x54] ss:$8 sps:$4 sm:$0xff]  }
  0x1a   : > { %352 = vmatpush1.bf16.msra.mxu0 %v659_v2  ;;  %v665_v7 = vld [vmem:[%s842_s1 + $0x50] ss:$8 sps:$4 sm:$0xff]   ;;  %v666_v8 = vld [vmem:[%s842_s1 + $0x44] ss:$8 sps:$4 sm:$0xff]   ;;  %v668_v9 = vld [vmem:[%s842_s1 + $0x40] ss:$8 sps:$4 sm:$0xff]  }
  0x1b   : > { %353 = vmatprep.subr.bf16.mxu0 %v660_v4  ;;  %v669_v10 = vld [vmem:[%s842_s1 + $0x34] ss:$8 sps:$4 sm:$0xff]   ;;  %v671_v11 = vld [vmem:[%s842_s1 + $0x30] ss:$8 sps:$4 sm:$0xff]   ;;  %v672_v12 = vld [vmem:[%s842_s1 + $0x24] ss:$8 sps:$4 sm:$0xff]  }
  0x1c   : > { %v674_v13 = vld [vmem:[%s842_s1 + $0x20] ss:$8 sps:$4 sm:$0xff]   ;;  %v675_v14 = vld [vmem:[%s842_s1 + $0x14] ss:$8 sps:$4 sm:$0xff]   ;;  %v677_v15 = vld [vmem:[%s842_s1 + $0x10] ss:$8 sps:$4 sm:$0xff]  }
  0x1d   : > { %v678_v16 = vld [vmem:[%s842_s1 + $0x4] ss:$8 sps:$4 sm:$0xff]   ;;  %v680_v17 = vld [vmem:[%s842_s1] ss:$8 sps:$4 sm:$0xff]   ;;  %vm411_vm1 = vcmask 7168   ;;  %v414_v33 = vld [vmem:[#allocation4] sm:$0xff] }
  0x1e   : > { %354 = vmatpush1.bf16.msra.mxu0 %v662_v5  ;;  %v401_v31 = vld [vmem:[#allocation3] sm:$0xff]  ;;  %v402_v36 = vld [vmem:[#allocation3 + $0x8] sm:$0xff]  ;;  %v415_v39 = vld [vmem:[#allocation4 + $0x8] sm:$0xff] }
  0x1f   : > { %355 = vmatprep.subr.bf16.mxu0 %v663_v6 }
  0x22   : > { %356 = vmatpush1.bf16.msra.mxu0 %v665_v7 }
  0x23   : > { %357 = vmatprep.subr.bf16.mxu0 %v666_v8 }
  0x26   : > { %358 = vmatpush1.bf16.msra.mxu0 %v668_v9 }
  0x27   : > { %359 = vmatprep.subr.bf16.mxu0 %v669_v10 }
  0x2a   : > { %360 = vmatpush1.bf16.msra.mxu0 %v671_v11 }
  0x2b   : > { %361 = vmatprep.subr.bf16.mxu0 %v672_v12 }
  0x2e   : > { %362 = vmatpush1.bf16.msra.mxu0 %v674_v13 }
  0x2f   : > { %363 = vmatprep.subr.bf16.mxu0 %v675_v14 }
  0x32   : > { %364 = vmatpush1.bf16.msra.mxu0 %v677_v15 }
  0x33   : > { %365 = vmatprep.subr.bf16.mxu0 %v678_v16 }
  0x36   : > { %366 = vmatpush1.bf16.msra.mxu0 %v680_v17 }
  0x39   : > { %384 = vmatmul.mubr.bf16.vlgmr.msra.gmra.mxu0 %v681_v18 }
  0xf9   : > { %v385_v19 = vpop.f32.mrf.mxu0 }
  0xfa   : > { %397 = vst [vmem:[#allocation2 + $0x10] sm:$0xff] %v385_v19  ;;  %v416_v22 = vmul.f32 %v385_v19, %v385_v19 }
  0xfb   : > { %v387_v20 = vpop.f32.mrf.mxu0 }
  0xfc   : > { %398 = vst [vmem:[#allocation2] sm:$0xff] %v387_v20  ;;  %v403_v21 = vadd.f32 %v387_v20, %v385_v19  ;;  %v417_v23 = vmul.f32 %v387_v20, %v387_v20 }
  0xfd   : > { %v389_v24 = vpop.f32.mrf.mxu0 }
  0xfe   : > { %399 = vst [vmem:[#allocation2 + $0x18] sm:$0xff] %v389_v24  ;;  %404 = vadd.xlane.f32.xlu0 %v403_v21  ;;  %v420_v25 = vadd.f32 %v417_v23, %v416_v22  ;;  %v418_v29 = vmul.f32 %v389_v24, %v389_v24 }
  0xff   : > { %v391_v26 = vpop.f32.mrf.mxu0 }
 0x100   : > { %400 = vst [vmem:[#allocation2 + $0x8] sm:$0xff] %v391_v26  ;;  %v419_v27 = vmul.f32 %v391_v26, %v391_v26  ;;  %421 = vadd.xlane.f32.xlu1 %v420_v25  ;;  %v406_v28 = vadd.f32 %v391_v26, %v389_v24 }
 0x102   : > { %407 = vadd.xlane.f32.xlu0 %v406_v28  ;;  %v423_v30 = vadd.f32 %v419_v27, %v418_v29 }
 0x104   : > { %424 = vadd.xlane.f32.xlu1 %v423_v30 }
 0x187   : > { %v405_v32 = vpop.xlane.xlu0 %404 }
 0x188   : > { %v409_v34 = vadd.f32 %v405_v32, %v401_v31 }
 0x189   : > { %v422_v35 = vpop.xlane.xlu1 %421 }
 0x18a   : > { %412 = vst.msk [vmem:[#allocation3] sm:$0xff] %vm411_vm1, %v409_v34  ;;  %v426_v37 = vadd.f32 %v422_v35, %v414_v33 }
 0x18b   : > { %v408_v38 = vpop.xlane.xlu0 %407 }
 0x18c   : > { %428 = vst.msk [vmem:[#allocation4] sm:$0xff] %vm411_vm1, %v426_v37  ;;  %v410_v40 = vadd.f32 %v408_v38, %v402_v36 }
 0x18d   : > { %v425_v41 = vpop.xlane.xlu1 %424 }
 0x18e   : > { %413 = vst.msk [vmem:[#allocation3 + $0x8] sm:$0xff] %vm411_vm1, %v410_v40  ;;  %v427_v42 = vadd.f32 %v425_v41, %v415_v39 }
 0x190   : > { %429 = vst.msk [vmem:[#allocation4 + $0x8] sm:$0xff] %vm411_vm1, %v427_v42 }
 0x191 PF: > { %p620_p6 = scmp.ne.s32.totalorder %s702_s15, 1 }
 0x193   : > { %433 = sbr.rel (%p620_p6) target bundleno = 575 (0x23f), region = 48 }
 0x198   : > { %v434_v43 = vld [vmem:[#allocation3] sm:$0xff]  ;;  %v438_v44 = vld [vmem:[#allocation4] sm:$0xff]  ;;  %v714_v45 = vmov 0   ;;  %v435_v48 = vld [vmem:[#allocation3 + $0x8] sm:$0xff] }
 0x199   : > { %682 = vset.pattern.permute.xlu0 %v714_v45  ;;  %v436_v46 = vmul.f32 0.0051020407, %v434_v43  ;;  %v440_v47 = vmul.f32 0.0051020407, %v438_v44  ;;  %683 = vset.pattern.permute.xlu1 %v714_v45  ;;  %v439_v49 = vld [vmem:[#allocation4 + $0x8] sm:$0xff]  ;;  %v448_v60 = vld [vmem:[%s843_s2] sm:$0xff] }
 0x19a   : > { %v437_v50 = vmul.f32 0.0051020407, %v435_v48  ;;  %v441_v51 = vmul.f32 0.0051020407, %v439_v49  ;;  %v449_v61 = vld [vmem:[%s843_s2 + $0x8] sm:$0xff]  ;;  %v456_v2 = vld [vmem:[%s844_s3] sm:$0xff] }
 0x19b   : > { %v442_v52 = vmul.f32 %v436_v46, %v436_v46  ;;  %v457_v4 = vld [vmem:[%s844_s3 + $0x8] sm:$0xff]  ;;  %v465_v8 = vld [vmem:[#allocation2 + $0x10] sm:$0xff]  ;;  %v466_v9 = vld [vmem:[#allocation2] sm:$0xff] }
 0x19c   : > { %v443_v53 = vmul.f32 %v437_v50, %v437_v50  ;;  %v467_v13 = vld [vmem:[#allocation2 + $0x18] sm:$0xff]  ;;  %v468_v14 = vld [vmem:[#allocation2 + $0x8] sm:$0xff] }
 0x19d   : > { %v444_v54 = vsub.f32 %v440_v47, %v442_v52 }
 0x19e   : > { %v445_v55 = vsub.f32 %v441_v51, %v443_v53 }
 0x19f   : > { %v446_v56 = vmax.f32 %v444_v54, 0.0 }
 0x1a0   : > { %v447_v57 = vmax.f32 %v445_v55, 0.0 }
 0x1a1   : > { %v450_v58 = vadd.f32 1e-05, %v446_v56 }
 0x1a2   : > { %v451_v59 = vadd.f32 1e-05, %v447_v57 }
 0x1a3   : > { %684 = vrsqrt.f32 %v450_v58 }
 0x1a4   : > { %686 = vrsqrt.f32 %v451_v59 }
 0x1b0   : > { %v685_v62 = vpop.eup %684 }
 0x1b1   : > { %v687_v63 = vpop.eup %686  ;;  %v454_v0 = vmul.f32 %v685_v62, %v448_v60 }
 0x1b2   : > { %v455_v1 = vmul.f32 %v687_v63, %v449_v61 }
 0x1b3   : > { %471 = vperm.xlu0 %682, %v454_v0   ;;  %v458_v3 = vmul.f32 %v454_v0, %v436_v46 }
 0x1b4   : > { %v459_v5 = vmul.f32 %v455_v1, %v437_v50 }
 0x1b5   : > { %v460_v6 = vsub.f32 %v456_v2, %v458_v3 }
 0x1b6   : > { %v461_v7 = vsub.f32 %v457_v4, %v459_v5 }
 0x1b7   : > { %476 = vperm.xlu0 %682, %v455_v1   ;;  %485 = vperm.xlu1 %683, %v460_v6  }
 0x1bb   : > { %490 = vperm.xlu1 %683, %v461_v7  }
 0x22e   : > { %v472_v10 = vpop.permute.xlu0 %471 }
 0x22f   : > { %v479_v11 = vmul.f32 %v472_v10, %v465_v8  ;;  %v480_v12 = vmul.f32 %v472_v10, %v466_v9 }
 0x232   : > { %v477_v15 = vpop.permute.xlu0 %476  ;;  %v486_v16 = vpop.permute.xlu1 %485 }
 0x233   : > { %v493_v17 = vadd.f32 %v486_v16, %v479_v11  ;;  %v494_v18 = vadd.f32 %v486_v16, %v480_v12  ;;  %v481_v19 = vmul.f32 %v477_v15, %v467_v13  ;;  %v482_v20 = vmul.f32 %v477_v15, %v468_v14 }
 0x235   : > { %vm497_vm2 = vcmp.ge.f32.partialorder %v493_v17, 0.0  ;;  %vm498_vm3 = vcmp.ge.f32.partialorder %v494_v18, 0.0  ;;  %v501_v21 = vmul.f32 0.2, %v493_v17  ;;  %v502_v22 = vmul.f32 0.2, %v494_v18 }
 0x236   : > { %v491_v23 = vpop.permute.xlu1 %490 }
 0x237   : > { %v505_v24 = vsel %vm497_vm2, %v493_v17, %v501_v21  ;;  %v506_v25 = vsel %vm498_vm3, %v494_v18, %v502_v22  ;;  %v495_v26 = vadd.f32 %v491_v23, %v481_v19  ;;  %v496_v27 = vadd.f32 %v491_v23, %v482_v20 }
 0x238   : > { %v628_v28 = vpack.c.bf16 %v506_v25, %v505_v24 }
 0x239   : > { %vm499_vm4 = vcmp.ge.f32.partialorder %v495_v26, 0.0  ;;  %vm500_vm5 = vcmp.ge.f32.partialorder %v496_v27, 0.0  ;;  %v503_v29 = vmul.f32 0.2, %v495_v26  ;;  %v504_v30 = vmul.f32 0.2, %v496_v27 }
 0x23a   : > { %521 = vst [vmem:[%s845_s4] sm:$0xff] %v628_v28 }
 0x23b   : > { %v507_v31 = vsel %vm499_vm4, %v495_v26, %v503_v29  ;;  %v508_v32 = vsel %vm500_vm5, %v496_v27, %v504_v30 }
 0x23c   : > { %v629_v33 = vpack.c.bf16 %v508_v32, %v507_v31 }
 0x23e   : > { %522 = vst [vmem:[%s845_s4 + $0x8] sm:$0xff] %v629_v33 }
 0x23f PF: > { %s14_s17 = sadd.s32 1, %s710_s17   ;;  %s846_s15 = smov %s706_s16 }
 0x240   : > { %p11_p7 = scmp.ge.s32.totalorder %s14_s17, 4   ;;  %s847_s16 = smov %s849_s18 }
 0x242   :  { %13 = sbr.rel (!%p11_p7) target bundleno = 2 (0x2), region = 80 }

// kernel: discriminator_forward.6
= control target key start
LH: loop header
LB: loop body
LE: loop exit
PB: predicated region body
PF: predicated region fallthrough
CT: control target
= control target key end

     0   :  { %s829_s15 = smov 0   ;;  %s831_s16 = smov 0   ;;  %s938_s0 = inlined_call_operand.vmem [shape: bf16[32,144], index: 0, kind: input, shape index: {}]   ;;  %s939_s1 = inlined_call_operand.vmem [shape: bf16[144,128], index: 1, kind: input, shape index: {}]   ;;  %s940_s2 = inlined_call_operand.vmem [shape: f32[32,1], index: 2, kind: input, shape index: {}]   ;;  %s941_s3 = inlined_call_operand.vmem [shape: f32[32,1], index: 3, kind: input, shape index: {}]   ;;  %s942_s4 = inlined_call_operand.vmem [shape: bf16[32,128], index: 4, kind: output, shape index: {}]  }
   0x1   :  { %s833_s17 = smov 0  }
   0x2 LB: > { %s26_s18 = sadd.s32 1, %s795_s16  ;;  %p664_p0 = scmp.ge.s32.totalorder %s799_s17, 1  ;;  %s799_s17 = sphi %s833_s17, %s14_s17   ;;  %s795_s16 = sphi %s831_s16, %s944_s16   ;;  %s791_s15 = sphi %s829_s15, %s943_s15  }
   0x3   : > { %p28_p1 = scmp.ge.s32.totalorder %s26_s18, 2  ;;  %p183_p2 = scmp.lt.s32.totalorder %s799_s17, 3 }
   0x5   : > { %s946_s18 = smov (%p28_p1, %s26_s18), 0  ;;  %p184_p3 = pnand %p664_p0, %p183_p2 }
   0x6   : > { %p225_p4 = scmp.eq.s32.totalorder (!%p184_p3), %s791_s15, 0 }
   0x7   : > { %187 = sbr.rel (%p184_p3) target bundleno = 586 (0x24a), region = 36 }
   0xc   : > { %230 = sbr.rel (!%p225_p4) target bundleno = 17 (0x11), region = 40  ;;  %vm231_vm0 = vcmask (%p225_p4), 7168   ;;  %v801_v0 = vmov (%p225_p4), 0.0  }
   0xd   : > { %232 = vst.msk [vmem:[#allocation3] sm:$0xff] (%p225_p4), %vm231_vm0, %v801_v0  ;;  %233 = vst.msk [vmem:[#allocation3 + $0x8] sm:$0xff] (%p225_p4), %vm231_vm0, %v801_v0 }
   0xe   : > { %234 = vst.msk [vmem:[#allocation3 + $0x10] sm:$0xff] (%p225_p4), %vm231_vm0, %v801_v0  ;;  %235 = vst.msk [vmem:[#allocation3 + $0x18] sm:$0xff] (%p225_p4), %vm231_vm0, %v801_v0 }
   0xf   : > { %236 = vst.msk [vmem:[#allocation4] sm:$0xff] (%p225_p4), %vm231_vm0, %v801_v0  ;;  %237 = vst.msk [vmem:[#allocation4 + $0x8] sm:$0xff] (%p225_p4), %vm231_vm0, %v801_v0 }
  0x10   : > { %238 = vst.msk [vmem:[#allocation4 + $0x10] sm:$0xff] (%p225_p4), %vm231_vm0, %v801_v0  ;;  %239 = vst.msk [vmem:[#allocation4 + $0x18] sm:$0xff] (%p225_p4), %vm231_vm0, %v801_v0 }
  0x11 PF: > { %p666_p5 = scmp.ne.s32.totalorder %s791_s15, 0 }
  0x13   : > { %242 = sbr.rel (%p666_p5) target bundleno = 407 (0x197), region = 44 }
  0x18   : > { %v752_v1 = vld [vmem:[%s939_s1 + $0x38] sm:$0xff]   ;;  %v802_v2 = vmov 0   ;;  %v753_v3 = vld [vmem:[%s939_s1 + $0x30] sm:$0xff]   ;;  %v754_v4 = vld [vmem:[%s939_s1 + $0x28] sm:$0xff]   ;;  %vm337_vm1 = vcmask 130048   ;;  %vm415_vm2 = vcmask 7168  }
  0x19   : > { %344 = vmatprep.subr.bf16.mxu0 %v802_v2  ;;  %707 = vmatprep.subr.bf16.mxu1 %v802_v2  ;;  %v755_v5 = vld [vmem:[%s939_s1 + $0x20] sm:$0xff]   ;;  %v766_v7 = vld [vmem:[%s938_s0 + $0x14] ss:$8 sps:$4 sm:$0xff]   ;;  %v758_v10 = vld [vmem:[%s939_s1 + $0x8] sm:$0xff]  }
  0x1a   : > { %345 = vmatpush1.bf16.msra.mxu0 %v752_v1  ;;  %716 = vmatpush1.bf16.msra.mxu1 %v752_v1  ;;  %v763_v6 = vld [vmem:[%s938_s0 + $0x4] ss:$8 sps:$4 sm:$0xff]   ;;  %v756_v8 = vld [vmem:[%s939_s1 + $0x18] sm:$0xff]   ;;  %v757_v9 = vld [vmem:[%s939_s1 + $0x10] sm:$0xff]  }
  0x1b   : > { %346 = vmatprep.subr.bf16.mxu0 %v802_v2  ;;  %708 = vmatprep.subr.bf16.mxu1 %v802_v2  ;;  %v759_v11 = vld [vmem:[%s939_s1] sm:$0xff]   ;;  %v764_v14 = vld [vmem:[%s938_s0 + $0x10] ss:$8 sps:$4 sm:$0xff]   ;;  %v400_v39 = vld [vmem:[#allocation3 + $0x8] sm:$0xff] }
  0x1c   : > { %680 = vmatprep.mubr.msk.bf16.mxu0 %vm337_vm1, %v763_v6  ;;  %681 = vmatprep.mubr.msk.bf16.mxu1 %vm337_vm1, %v766_v7  ;;  %v760_v12 = vld [vmem:[%s939_s1 + $0x40] sm:$0xff]   ;;  %v401_v27 = vld [vmem:[#allocation3 + $0x10] sm:$0xff]  ;;  %v402_v33 = vld [vmem:[#allocation3 + $0x18] sm:$0xff] }
  0x1d   : > { %v761_v13 = vld [vmem:[%s938_s0] ss:$8 sps:$4 sm:$0xff]   ;;  %v422_v45 = vld [vmem:[#allocation4 + $0x10] sm:$0xff]  ;;  %v423_v46 = vld [vmem:[#allocation4 + $0x18] sm:$0xff] }
  0x1e   : > { %347 = vmatpush1.bf16.msra.mxu0 %v753_v3  ;;  %717 = vmatpush1.bf16.msra.mxu1 %v753_v3  ;;  %v399_v28 = vld [vmem:[#allocation3] sm:$0xff]  ;;  %v421_v40 = vld [vmem:[#allocation4 + $0x8] sm:$0xff] }
  0x1f   : > { %348 = vmatprep.subr.bf16.mxu0 %v802_v2  ;;  %709 = vmatprep.subr.bf16.mxu1 %v802_v2  ;;  %v420_v34 = vld [vmem:[#allocation4] sm:$0xff] }
  0x22   : > { %349 = vmatpush1.bf16.msra.mxu0 %v754_v4  ;;  %718 = vmatpush1.bf16.msra.mxu1 %v754_v4 }
  0x23   : > { %350 = vmatprep.subr.bf16.mxu0 %v802_v2  ;;  %710 = vmatprep.subr.bf16.mxu1 %v802_v2 }
  0x26   : > { %351 = vmatpush1.bf16.msra.mxu0 %v755_v5  ;;  %719 = vmatpush1.bf16.msra.mxu1 %v755_v5 }
  0x27   : > { %352 = vmatprep.subr.bf16.mxu0 %v802_v2  ;;  %711 = vmatprep.subr.bf16.mxu1 %v802_v2 }
  0x2a   : > { %353 = vmatpush1.bf16.msra.mxu0 %v756_v8  ;;  %720 = vmatpush1.bf16.msra.mxu1 %v756_v8 }
  0x2b   : > { %354 = vmatprep.subr.bf16.mxu0 %v802_v2  ;;  %712 = vmatprep.subr.bf16.mxu1 %v802_v2 }
  0x2e   : > { %355 = vmatpush1.bf16.msra.mxu0 %v757_v9  ;;  %721 = vmatpush1.bf16.msra.mxu1 %v757_v9 }
  0x2f   : > { %356 = vmatprep.subr.bf16.mxu0 %v802_v2  ;;  %713 = vmatprep.subr.bf16.mxu1 %v802_v2 }
  0x32   : > { %357 = vmatpush1.bf16.msra.mxu0 %v758_v10  ;;  %722 = vmatpush1.bf16.msra.mxu1 %v758_v10 }
  0x33   : > { %358 = vmatprep.subr.bf16.mxu0 %v802_v2  ;;  %714 = vmatprep.subr.bf16.mxu1 %v802_v2 }
  0x36   : > { %359 = vmatpush1.bf16.msra.mxu0 %v759_v11  ;;  %723 = vmatpush1.bf16.msra.mxu1 %v759_v11 }
  0x37   : > { %374 = vmatprep.subr.bf16.mxu0 %v802_v2  ;;  %715 = vmatprep.subr.bf16.mxu1 %v802_v2 }
  0x3a   : > { %375 = vmatpush2.bf16.msra.mxu0 %v760_v12  ;;  %724 = vmatpush2.bf16.msra.mxu1 %v760_v12 }
  0x3d   : > { %377 = vmatmul.mubr.bf16.vlgmr.msra.gmra.mxu0 %v761_v13  ;;  %385 = vmatmul.mubr.bf16.vlgmr.msra.gmra.mxu1 %v764_v14 }
  0xfd   : > { %v378_v15 = vpop.f32.mrf.mxu0  ;;  %v386_v16 = vpop.f32.mrf.mxu1 }
  0xfe   : > { %395 = vst [vmem:[#allocation2 + $0x10] sm:$0xff] %v378_v15  ;;  %397 = vst [vmem:[#allocation2 + $0x18] sm:$0xff] %v386_v16  ;;  %407 = vadd.xlane.f32.xlu1 %v386_v16  ;;  %403 = vadd.xlane.f32.xlu0 %v378_v15  ;;  %v424_v19 = vmul.f32 %v378_v15, %v378_v15  ;;  %v426_v25 = vmul.f32 %v386_v16, %v386_v16 }
  0xff   : > { %v380_v17 = vpop.f32.mrf.mxu0  ;;  %v388_v18 = vpop.f32.mrf.mxu1 }
 0x101   : > { %v381_v20 = vpop.f32.mrf.mxu0  ;;  %v389_v21 = vpop.f32.mrf.mxu1 }
 0x102   : > { %396 = vst [vmem:[#allocation2] sm:$0xff] %v381_v20  ;;  %398 = vst [vmem:[#allocation2 + $0x8] sm:$0xff] %v389_v21  ;;  %409 = vadd.xlane.f32.xlu1 %v389_v21  ;;  %428 = vadd.xlane.f32.xlu0 %v424_v19  ;;  %v425_v24 = vmul.f32 %v381_v20, %v381_v20  ;;  %v427_v26 = vmul.f32 %v389_v21, %v389_v21 }
 0x103   : > { %v383_v22 = vpop.f32.mrf.mxu0  ;;  %v391_v23 = vpop.f32.mrf.mxu1 }
 0x106   : > { %405 = vadd.xlane.f32.xlu0 %v381_v20  ;;  %430 = vadd.xlane.f32.xlu1 %v425_v24 }
 0x10a   : > { %432 = vadd.xlane.f32.xlu0 %v426_v25  ;;  %434 = vadd.xlane.f32.xlu1 %v427_v26 }
 0x187   : > { %v408_v29 = vpop.xlane.xlu1 %407  ;;  %v404_v30 = vpop.xlane.xlu0 %403 }
 0x188   : > { %v413_v31 = vadd.f32 %v408_v29, %v401_v27  ;;  %v411_v32 = vadd.f32 %v404_v30, %v399_v28 }
 0x18a   : > { %418 = vst.msk [vmem:[#allocation3 + $0x10] sm:$0xff] %vm415_vm2, %v413_v31  ;;  %416 = vst.msk [vmem:[#allocation3] sm:$0xff] %vm415_vm2, %v411_v32 }
 0x18b   : > { %v410_v35 = vpop.xlane.xlu1 %409  ;;  %v429_v36 = vpop.xlane.xlu0 %428 }
 0x18c   : > { %v414_v37 = vadd.f32 %v410_v35, %v402_v33  ;;  %v436_v38 = vadd.f32 %v429_v36, %v420_v34 }
 0x18e   : > { %419 = vst.msk [vmem:[#allocation3 + $0x18] sm:$0xff] %vm415_vm2, %v414_v37  ;;  %440 = vst.msk [vmem:[#allocation4] sm:$0xff] %vm415_vm2, %v436_v38 }
 0x18f   : > { %v406_v41 = vpop.xlane.xlu0 %405  ;;  %v431_v42 = vpop.xlane.xlu1 %430 }
 0x190   : > { %v412_v43 = vadd.f32 %v406_v41, %v400_v39  ;;  %v437_v44 = vadd.f32 %v431_v42, %v421_v40 }
 0x192   : > { %417 = vst.msk [vmem:[#allocation3 + $0x8] sm:$0xff] %vm415_vm2, %v412_v43  ;;  %441 = vst.msk [vmem:[#allocation4 + $0x8] sm:$0xff] %vm415_vm2, %v437_v44 }
 0x193   : > { %v433_v47 = vpop.xlane.xlu0 %432  ;;  %v435_v48 = vpop.xlane.xlu1 %434 }
 0x194   : > { %v438_v49 = vadd.f32 %v433_v47, %v422_v45  ;;  %v439_v50 = vadd.f32 %v435_v48, %v423_v46 }
 0x196   : > { %442 = vst.msk [vmem:[#allocation4 + $0x10] sm:$0xff] %vm415_vm2, %v438_v49  ;;  %443 = vst.msk [vmem:[#allocation4 + $0x18] sm:$0xff] %vm415_vm2, %v439_v50 }
 0x197 PF: > { %p682_p6 = scmp.ne.s32.totalorder %s791_s15, 1 }
 0x199   : > { %447 = sbr.rel (%p682_p6) target bundleno = 586 (0x24a), region = 48 }
 0x19e   : > { %v450_v51 = vld [vmem:[#allocation3 + $0x10] sm:$0xff]  ;;  %v803_v53 = vmov 0   ;;  %v448_v56 = vld [vmem:[#allocation3] sm:$0xff]  ;;  %v451_v60 = vld [vmem:[#allocation3 + $0x18] sm:$0xff] }
 0x19f   : > { %v458_v52 = vld [vmem:[#allocation4 + $0x10] sm:$0xff]  ;;  %768 = vset.pattern.permute.xlu1 %v803_v53  ;;  %767 = vset.pattern.permute.xlu0 %v803_v53  ;;  %v454_v54 = vmul.f32 0.015625, %v450_v51  ;;  %v456_v57 = vld [vmem:[#allocation4] sm:$0xff]  ;;  %v452_v58 = vmul.f32 0.015625, %v448_v56  ;;  %v459_v61 = vld [vmem:[#allocation4 + $0x18] sm:$0xff]  ;;  %v455_v63 = vmul.f32 0.015625, %v451_v60 }
 0x1a0   : > { %v462_v55 = vmul.f32 0.015625, %v458_v52  ;;  %v460_v59 = vmul.f32 0.015625, %v456_v57  ;;  %v463_v0 = vmul.f32 0.015625, %v459_v61  ;;  %v449_v1 = vld [vmem:[#allocation3 + $0x8] sm:$0xff]  ;;  %v478_v20 = vld [vmem:[%s940_s2 + $0x10] sm:$0xff]  ;;  %v476_v21 = vld [vmem:[%s940_s2] sm:$0xff] }
 0x1a1   : > { %v466_v62 = vmul.f32 %v454_v54, %v454_v54  ;;  %v457_v2 = vld [vmem:[#allocation4 + $0x8] sm:$0xff]  ;;  %v464_v3 = vmul.f32 %v452_v58, %v452_v58  ;;  %v453_v4 = vmul.f32 0.015625, %v449_v1  ;;  %v467_v7 = vmul.f32 %v455_v63, %v455_v63  ;;  %v479_v23 = vld [vmem:[%s940_s2 + $0x18] sm:$0xff]  ;;  %v492_v34 = vld [vmem:[%s941_s3] sm:$0xff] }
 0x1a2   : > { %v461_v5 = vmul.f32 0.015625, %v457_v2  ;;  %v477_v26 = vld [vmem:[%s940_s2 + $0x8] sm:$0xff]  ;;  %v495_v40 = vld [vmem:[%s941_s3 + $0x18] sm:$0xff]  ;;  %v494_v41 = vld [vmem:[%s941_s3 + $0x10] sm:$0xff] }
 0x1a3   : > { %v470_v6 = vsub.f32 %v462_v55, %v466_v62  ;;  %v468_v8 = vsub.f32 %v460_v59, %v464_v3  ;;  %v465_v9 = vmul.f32 %v453_v4, %v453_v4  ;;  %v471_v11 = vsub.f32 %v463_v0, %v467_v7  ;;  %v493_v33 = vld [vmem:[%s941_s3 + $0x8] sm:$0xff]  ;;  %v507_v47 = vld [vmem:[#allocation2] sm:$0xff]  ;;  %v506_v48 = vld [vmem:[#allocation2 + $0x10] sm:$0xff] }
 0x1a4   : > { %v509_v52 = vld [vmem:[#allocation2 + $0x8] sm:$0xff] }
 0x1a5   : > { %v474_v10 = vmax.f32 %v470_v6, 0.0  ;;  %v472_v12 = vmax.f32 %v468_v8, 0.0  ;;  %v469_v13 = vsub.f32 %v461_v5, %v465_v9  ;;  %v475_v15 = vmax.f32 %v471_v11, 0.0 }
 0x1a7   : > { %v482_v14 = vadd.f32 1e-05, %v474_v10  ;;  %v480_v16 = vadd.f32 1e-05, %v472_v12  ;;  %v473_v17 = vmax.f32 %v469_v13, 0.0 }
 0x1a8   : > { %v483_v18 = vadd.f32 1e-05, %v475_v15 }
 0x1a9   : > { %769 = vrsqrt.f32 %v482_v14  ;;  %v481_v19 = vadd.f32 1e-05, %v473_v17 }
 0x1aa   : > { %771 = vrsqrt.f32 %v480_v16 }
 0x1ab   : > { %773 = vrsqrt.f32 %v483_v18 }
 0x1ac   : > { %775 = vrsqrt.f32 %v481_v19 }
 0x1b6   : > { %v770_v22 = vpop.eup %769 }
 0x1b7   : > { %v772_v24 = vpop.eup %771  ;;  %v490_v25 = vmul.f32 %v770_v22, %v478_v20 }
 0x1b8   : > { %v774_v27 = vpop.eup %773  ;;  %v488_v28 = vmul.f32 %v772_v24, %v476_v21 }
 0x1b9   : > { %v776_v29 = vpop.eup %775  ;;  %522 = vperm.xlu1 %768, %v490_v25   ;;  %v491_v30 = vmul.f32 %v774_v27, %v479_v23  ;;  %v498_v37 = vmul.f32 %v490_v25, %v454_v54  ;;  %v508_v54 = vld [vmem:[#allocation2 + $0x18] sm:$0xff] }
 0x1ba   : > { %512 = vperm.xlu0 %767, %v488_v28   ;;  %v496_v31 = vmul.f32 %v488_v28, %v452_v58  ;;  %v489_v32 = vmul.f32 %v776_v29, %v477_v26 }
 0x1bb   : > { %v499_v36 = vmul.f32 %v491_v30, %v455_v63  ;;  %v502_v43 = vsub.f32 %v494_v41, %v498_v37 }
 0x1bc   : > { %v497_v35 = vmul.f32 %v489_v32, %v453_v4  ;;  %v500_v39 = vsub.f32 %v492_v34, %v496_v31 }
 0x1bd   : > { %527 = vperm.xlu1 %768, %v491_v30   ;;  %v503_v42 = vsub.f32 %v495_v40, %v499_v36 }
 0x1be   : > { %517 = vperm.xlu0 %767, %v489_v32   ;;  %v501_v38 = vsub.f32 %v493_v33, %v497_v35 }
 0x1c1   : > { %541 = vperm.xlu1 %768, %v501_v38  }
 0x1c2   : > { %536 = vperm.xlu0 %767, %v500_v39  }
 0x1c5   : > { %551 = vperm.xlu1 %768, %v503_v42  }
 0x1c6   : > { %546 = vperm.xlu0 %767, %v502_v43  }
 0x234   : > { %v523_v44 = vpop.permute.xlu1 %522 }
 0x235   : > { %v513_v45 = vpop.permute.xlu0 %512  ;;  %v532_v60 = vmul.f32 %v523_v44, %v508_v54 }
 0x236   : > { %v530_v51 = vmul.f32 %v513_v45, %v506_v48 }
 0x238   : > { %v528_v46 = vpop.permute.xlu1 %527 }
 0x239   : > { %v518_v49 = vpop.permute.xlu0 %517  ;;  %v533_v58 = vmul.f32 %v528_v46, %v509_v52 }
 0x23a   : > { %v531_v50 = vmul.f32 %v518_v49, %v507_v47 }
 0x23c   : > { %v542_v53 = vpop.permute.xlu1 %541 }
 0x23d   : > { %v555_v55 = vadd.f32 %v542_v53, %v531_v50  ;;  %v537_v56 = vpop.permute.xlu0 %536 }
 0x23e   : > { %v554_v57 = vadd.f32 %v537_v56, %v530_v51 }
 0x23f   : > { %vm559_vm3 = vcmp.ge.f32.partialorder %v555_v55, 0.0  ;;  %v563_v59 = vmul.f32 0.2, %v555_v55 }
 0x240   : > { %vm558_vm4 = vcmp.ge.f32.partialorder %v554_v57, 0.0  ;;  %v562_v61 = vmul.f32 0.2, %v554_v57  ;;  %v552_v62 = vpop.permute.xlu1 %551 }
 0x241   : > { %v567_v63 = vsel %vm559_vm3, %v555_v55, %v563_v59  ;;  %v557_v0 = vadd.f32 %v552_v62, %v533_v58  ;;  %v547_v1 = vpop.permute.xlu0 %546 }
 0x242   : > { %v566_v2 = vsel %vm558_vm4, %v554_v57, %v562_v61  ;;  %v556_v3 = vadd.f32 %v547_v1, %v532_v60 }
 0x243   : > { %v699_v4 = vpack.c.bf16 %v567_v63, %v566_v2  ;;  %vm561_vm5 = vcmp.ge.f32.partialorder %v557_v0, 0.0  ;;  %v565_v5 = vmul.f32 0.2, %v557_v0 }
 0x244   : > { %vm560_vm6 = vcmp.ge.f32.partialorder %v556_v3, 0.0  ;;  %v564_v6 = vmul.f32 0.2, %v556_v3 }
 0x245   : > { %700 = vst [vmem:[%s942_s4] sm:$0xff] %v699_v4   ;;  %v569_v7 = vsel %vm561_vm5, %v557_v0, %v565_v5 }
 0x246   : > { %v568_v8 = vsel %vm560_vm6, %v556_v3, %v564_v6 }
 0x247   : > { %v704_v9 = vpack.c.bf16 %v569_v7, %v568_v8 }
 0x249   : > { %706 = vst [vmem:[%s942_s4 + $0x8] sm:$0xff] %v704_v9  }
 0x24a PF: > { %s14_s17 = sadd.s32 1, %s799_s17   ;;  %s943_s15 = smov %s795_s16 }
 0x24b   : > { %p11_p7 = scmp.ge.s32.totalorder %s14_s17, 4   ;;  %s944_s16 = smov %s946_s18 }
 0x24d   :  { %13 = sbr.rel (!%p11_p7) target bundleno = 2 (0x2), region = 80 }

// kernel: discriminator_forward.7
= control target key start
LH: loop header
LB: loop body
LE: loop exit
PB: predicated region body
PF: predicated region fallthrough
CT: control target
= control target key end

     0   :  { %s615_s1 = inlined_call_operand.vmem [shape: bf16[512,128], index: 1, kind: input, shape index: {}]   ;;  %s616_s0 = inlined_call_operand.vmem [shape: bf16[8,512], index: 0, kind: input, shape index: {}]   ;;  %s617_s2 = inlined_call_operand.vmem [shape: f32[8,128], index: 2, kind: output, shape index: {}]  }
   0x1   :  { %v455_v0 = vld [vmem:[%s615_s1 + $0x78] sm:$0xff]   ;;  %v459_v4 = vld [vmem:[%s615_s1 + $0x70] sm:$0xff]   ;;  %v463_v8 = vld [vmem:[%s615_s1 + $0x68] sm:$0xff]  }
   0x2   :  { %v456_v1 = vld [vmem:[%s615_s1 + $0xf8] sm:$0xff]   ;;  %411 = vmatprep.subr.bf16.mxu0 %v455_v0  ;;  %v460_v5 = vld [vmem:[%s615_s1 + $0xf0] sm:$0xff]   ;;  %v464_v9 = vld [vmem:[%s615_s1 + $0xe8] sm:$0xff]  }
   0x3   :  { %v457_v2 = vld [vmem:[%s615_s1 + $0x38] sm:$0xff]   ;;  %433 = vmatprep.subr.bf16.mxu1 %v456_v1  ;;  %v461_v6 = vld [vmem:[%s615_s1 + $0x30] sm:$0xff]   ;;  %v465_v10 = vld [vmem:[%s615_s1 + $0x28] sm:$0xff]  }
   0x4   :  { %v458_v3 = vld [vmem:[%s615_s1 + $0xb8] sm:$0xff]   ;;  %412 = vmatpush3.bf16.msra.mxu0 %v457_v2  ;;  %v462_v7 = vld [vmem:[%s615_s1 + $0xb0] sm:$0xff]   ;;  %v466_v11 = vld [vmem:[%s615_s1 + $0xa8] sm:$0xff]  }
   0x5   :  { %434 = vmatpush3.bf16.msra.mxu1 %v458_v3  ;;  %413 = vmatprep.subr.bf16.mxu0 %v459_v4  ;;  %v467_v12 = vld [vmem:[%s615_s1 + $0x60] sm:$0xff]   ;;  %v471_v16 = vld [vmem:[%s615_s1 + $0x58] sm:$0xff]   ;;  %v475_v20 = vld [vmem:[%s615_s1 + $0x50] sm:$0xff]  }
   0x6   :  { %435 = vmatprep.subr.bf16.mxu1 %v460_v5  ;;  %v468_v13 = vld [vmem:[%s615_s1 + $0xe0] sm:$0xff]   ;;  %v472_v17 = vld [vmem:[%s615_s1 + $0xd8] sm:$0xff]   ;;  %v476_v21 = vld [vmem:[%s615_s1 + $0xd0] sm:$0xff]  }
   0x7   :  { %v469_v14 = vld [vmem:[%s615_s1 + $0x20] sm:$0xff]   ;;  %v473_v18 = vld [vmem:[%s615_s1 + $0x18] sm:$0xff]   ;;  %v477_v22 = vld [vmem:[%s615_s1 + $0x10] sm:$0xff]  }
   0x8   :  { %414 = vmatpush3.bf16.msra.mxu0 %v461_v6  ;;  %v470_v15 = vld [vmem:[%s615_s1 + $0xa0] sm:$0xff]   ;;  %v474_v19 = vld [vmem:[%s615_s1 + $0x98] sm:$0xff]   ;;  %v478_v23 = vld [vmem:[%s615_s1 + $0x90] sm:$0xff]  }
   0x9   :  { %436 = vmatpush3.bf16.msra.mxu1 %v462_v7  ;;  %415 = vmatprep.subr.bf16.mxu0 %v463_v8  ;;  %v479_v24 = vld [vmem:[%s615_s1 + $0x48] sm:$0xff]   ;;  %v483_v28 = vld [vmem:[%s615_s1 + $0x40] sm:$0xff]  }
   0xa   :  { %437 = vmatprep.subr.bf16.mxu1 %v464_v9  ;;  %v480_v25 = vld [vmem:[%s615_s1 + $0xc8] sm:$0xff]   ;;  %v484_v29 = vld [vmem:[%s615_s1 + $0xc0] sm:$0xff]  }
   0xb   :  { %v481_v26 = vld [vmem:[%s615_s1 + $0x8] sm:$0xff]   ;;  %v485_v30 = vld [vmem:[%s615_s1] sm:$0xff]  }
   0xc   :  { %416 = vmatpush3.bf16.msra.mxu0 %v465_v10  ;;  %v482_v27 = vld [vmem:[%s615_s1 + $0x88] sm:$0xff]   ;;  %v486_v31 = vld [vmem:[%s615_s1 + $0x80] sm:$0xff]  }
   0xd   :  { %438 = vmatpush3.bf16.msra.mxu1 %v466_v11  ;;  %417 = vmatprep.subr.bf16.mxu0 %v467_v12  ;;  %v12_v32 = vld [vmem:[%s616_s0] sm:$0xff]  ;;  %v13_v33 = vld [vmem:[%s616_s0 + $0x8] sm:$0xff] }
   0xe   :  { %439 = vmatprep.subr.bf16.mxu1 %v468_v13  ;;  %v375_v34 = vcombine.low %v12_v32, %v12_v32  ;;  %v376_v35 = vcombine.high %v12_v32, %v12_v32  ;;  %v377_v36 = vcombine.low %v13_v33, %v13_v33  ;;  %v378_v37 = vcombine.high %v13_v33, %v13_v33 }
  0x10   :  { %418 = vmatpush3.bf16.msra.mxu0 %v469_v14  ;;  %316 = vmatprep.mubr.bf16.mxu0 %v376_v35 }
  0x11   :  { %440 = vmatpush3.bf16.msra.mxu1 %v470_v15  ;;  %419 = vmatprep.subr.bf16.mxu0 %v471_v16 }
  0x12   :  { %441 = vmatprep.subr.bf16.mxu1 %v472_v17  ;;  %356 = vmatprep.mubr.bf16.mxu1 %v378_v37 }
  0x14   :  { %420 = vmatpush3.bf16.msra.mxu0 %v473_v18 }
  0x15   :  { %442 = vmatpush3.bf16.msra.mxu1 %v474_v19  ;;  %421 = vmatprep.subr.bf16.mxu0 %v475_v20 }
  0x16   :  { %443 = vmatprep.subr.bf16.mxu1 %v476_v21 }
  0x18   :  { %422 = vmatpush3.bf16.msra.mxu0 %v477_v22 }
  0x19   :  { %444 = vmatpush3.bf16.msra.mxu1 %v478_v23  ;;  %423 = vmatprep.subr.bf16.mxu0 %v479_v24 }
  0x1a   :  { %445 = vmatprep.subr.bf16.mxu1 %v480_v25 }
  0x1c   :  { %424 = vmatpush3.bf16.msra.mxu0 %v481_v26 }
  0x1d   :  { %446 = vmatpush3.bf16.msra.mxu1 %v482_v27  ;;  %425 = vmatprep.subr.bf16.mxu0 %v483_v28 }
  0x1e   :  { %447 = vmatprep.subr.bf16.mxu1 %v484_v29 }
  0x20   :  { %426 = vmatpush3.bf16.msra.mxu0 %v485_v30 }
  0x21   :  { %448 = vmatpush3.bf16.msra.mxu1 %v486_v31 }
  0x23   :  { %317 = vmatmul.mubr.bf16.vlgmr.msra.gmra.mxu0 %v375_v34 }
  0x24   :  { %357 = vmatmul.mubr.bf16.vlgmr.msra.gmra.mxu1 %v377_v36 }
  0xe3   :  { %v427_v38 = vpop.f32.mrf.mxu0 }
  0xe4   :  { %v449_v39 = vpop.f32.mrf.mxu1 }
  0xe5   :  { %v428_v40 = vpop.f32.mrf.mxu0 }
  0xe6   :  { %v450_v41 = vpop.f32.mrf.mxu1  ;;  %v429_v42 = vadd.f32 %v428_v40, %v427_v38 }
  0xe7   :  { %v451_v43 = vadd.f32 %v450_v41, %v449_v39  ;;  %v430_v44 = vpop.f32.mrf.mxu0 }
  0xe8   :  { %v452_v45 = vpop.f32.mrf.mxu1 }
  0xe9   :  { %v359_v46 = vadd.f32 %v451_v43, %v429_v42  ;;  %v431_v47 = vpop.f32.mrf.mxu0 }
  0xea   :  { %v453_v48 = vpop.f32.mrf.mxu1 }
  0xeb   :  { %v364_v49 = vsub.f32 0.0, %v359_v46 }
  0xed   :  { %v365_v50 = vmul.f32 1.442695, %v364_v49 }
  0xef   :  { %491 = vpow2.f32 %v365_v50 }
  0xfc   :  { %v492_v51 = vpop.eup %491 }
  0xfd   :  { %v367_v52 = vadd.f32 1.0, %v492_v51 }
  0xff   :  { %493 = vrcp.f32 %v367_v52 }
 0x10c   :  { %v494_v53 = vpop.eup %493 }
 0x10d   :  { %v369_v54 = vmin.f32 %v494_v53, 1.0 }
 0x10f   :  { %370 = vst [vmem:[%s617_s2] sm:$0xff] %v369_v54 }

</bundles_post_ra>
